<compile_context>
chip_gen: v7x
topology: tpu7x:2x2x1
jax: 0.10.0
libtpu: 0.0.40
codegen_flags: <defaults>
</compile_context>

<pallas_src>
import math

import jax
import jax.numpy as jnp
from jax.experimental import pallas as pl
from jax.experimental.pallas import tpu as pltpu


def _make_kernel(iters, scale, loss_status, power, num_classes, slots_per_class):
    def kernel(inputs_flat_ref, inputs_x_ref, slots0_ref,
               wk_t_ref, bk_ref, w_ih_t_ref, w_hh_t_ref, b_ih_ref, b_hh_ref,
               out_ref, loss_ref):
        f32 = jnp.float32
        B, N, D = inputs_x_ref.shape
        S = slots0_ref.shape[0]
        BS = B * S
        mxu_dtype = inputs_flat_ref.dtype          # f32 or bf16 (MXU operands only)
        inv_D = 1.0 / D

        # ---- hoisted, loop-invariant work (loaded / computed exactly once) ----------
        inputs_x = inputs_x_ref[...]                                   # (B, N, D)
        w_ih_t = w_ih_t_ref[...]                                       # (D, 3D)
        w_hh_t = w_hh_t_ref[...]                                       # (D, 3D)
        b_ih = jnp.broadcast_to(b_ih_ref[...], (BS, 3 * D))            # (B*S, 3D) f32
        b_hh = jnp.broadcast_to(b_hh_ref[...], (BS, 3 * D))            # (B*S, 3D) f32

        # k = to_k(inputs): single batch-flattened (B*N, D) x (D, D) GEMM.
        k_flat = (jnp.dot(inputs_flat_ref[...], wk_t_ref[...],
                          preferred_element_type=f32) + bk_ref[...])   # (B*N, D) f32
        # Fold the attention scale into k and transpose once -> no per-iteration
        # scale multiply and no per-iteration XLU transpose.
        k_t = jnp.swapaxes((k_flat * scale).reshape(B, N, D), 1, 2).astype(mxu_dtype)

        # Initial slots broadcast over batch; the GRU hidden state is carried flat
        # (B*S, D) in f32 so both GRU GEMMs are plain 2-D matmuls.  Row order matches
        # the PyTorch `slots_prev.reshape(1, -1, d)` (b0 slots, then b1 slots, ...).
        slots_flat = jnp.concatenate([slots0_ref[...]] * B, axis=0)    # (B*S, D) f32

        attn = None
        updates_bsd = None
        for _ in range(iters):                       # trace-unrolled (iters is small)
            slots_prev_flat = slots_flat
            q = slots_flat.reshape(B, S, D).astype(mxu_dtype)          # to_q unused in fwd
            dots = jnp.einsum('bsd,bdn->bsn', q, k_t,
                              preferred_element_type=f32)              # (B, S, N) f32
            row_sum = jnp.sum(dots, axis=2, keepdims=True)             # (B, S, 1)
            tot_sum = jnp.sum(row_sum, axis=1, keepdims=True)          # (B, 1, 1)
            # dots / row_sum * tot_sum, with the divide on the EUP (approx reciprocal).
            dots = dots * (pl.reciprocal(row_sum, approx=True) * tot_sum)
            attn = jax.nn.sigmoid(dots)                                # (B, S, N) f32
            updates_bsd = jnp.einsum('bsn,bnd->bsd', attn.astype(mxu_dtype), inputs_x,
                                     preferred_element_type=f32) * inv_D   # (B, S, D)
            updates_flat = updates_bsd.reshape(BS, D)

            # Single-step GRU cell (nn.GRU, seq_len == 1), gates packed r | z | n:
            # two (B*S, D) x (D, 3D) GEMMs instead of six (B*S, D) x (D, D) ones.
            gi = jnp.dot(updates_flat.astype(mxu_dtype), w_ih_t,
                         preferred_element_type=f32) + b_ih            # (B*S, 3D)
            gh = jnp.dot(slots_prev_flat.astype(mxu_dtype), w_hh_t,
                         preferred_element_type=f32) + b_hh            # (B*S, 3D)
            r = jax.nn.sigmoid(gi[:, :D] + gh[:, :D])
            z = jax.nn.sigmoid(gi[:, D:2 * D] + gh[:, D:2 * D])
            n_g = jnp.tanh(gi[:, 2 * D:] + r * gh[:, 2 * D:])
            slots_flat = (1.0 - z) * n_g + z * slots_prev_flat

        # Per-class aggregation of the final `updates` + feature sum, done on the VPU
        # with contiguous slices/reductions (no one-hot matmul, no extra input array).
        upd_sum_d = jnp.sum(updates_bsd, axis=2)                       # (B, S)
        spc = slots_per_class
        out = loss_status * jnp.concatenate(
            [jnp.sum(upd_sum_d[:, c * spc:(c + 1) * spc], axis=1, keepdims=True)
             for c in range(num_classes)], axis=1)                     # (B, C)
        out_ref[...] = out.astype(out_ref.dtype)

        attn_relu = jnp.maximum(attn, 0.0)
        slot_loss = jnp.sum(attn_relu) * (1.0 / (B * S * N))
        loss_ref[...] = jnp.broadcast_to(slot_loss ** power, (1, 1)).astype(jnp.float32)

    return kernel


def slot_attention_forward(inputs, inputs_x, params, *, num_classes, slots_per_class,
                           iters=3, loss_status=1.0, power=1, mxu_dtype=jnp.float32):
    B, N, D = inputs.shape
    scale = D ** (-0.5)

    # Batch-flattened view of `inputs` so to_k is one (B*N, D) x (D, D) GEMM.
    # Only MXU operands get `mxu_dtype` (bf16 on v6e/v7x); biases / hidden state stay f32.
    args = (inputs.reshape(B * N, D).astype(mxu_dtype),
            inputs_x.astype(mxu_dtype),
            params['initial_slots'].astype(jnp.float32),
            params['wk_t'].astype(mxu_dtype),
            params['bk'].astype(jnp.float32),
            params['w_ih_t'].astype(mxu_dtype),
            params['w_hh_t'].astype(mxu_dtype),
            params['b_ih'].astype(jnp.float32),
            params['b_hh'].astype(jnp.float32))

    kernel = _make_kernel(iters, float(scale), float(loss_status), power,
                          num_classes, slots_per_class)

    # Everything is VMEM-resident at these sizes; no grid needed.
    # TODO(synk): when B or N grow beyond toy sizes, tile over N with a BlockSpec grid
    # (and add a "parallel" batch axis for v7x's two TensorCores) and set
    # pltpu.CompilerParams(vmem_limit_bytes=...) explicitly for v7x's smaller VMEM.
    out, slot_loss = pl.pallas_call(
        kernel,
        out_shape=(jax.ShapeDtypeStruct((B, num_classes), jnp.float32),
                   jax.ShapeDtypeStruct((1, 1), jnp.float32)),
        in_specs=[pl.BlockSpec(memory_space=pltpu.MemorySpace.VMEM) for _ in args],
        out_specs=(pl.BlockSpec(memory_space=pltpu.MemorySpace.VMEM),
                   pl.BlockSpec(memory_space=pltpu.MemorySpace.VMEM)),
    )(*args)
    return out, slot_loss[0, 0]


def init_params(key, dim, num_slots):
    keys = jax.random.split(key, 9)
    slots_mu = jax.random.normal(keys[0], (1, 1, dim), jnp.float32)
    slots_sigma = jax.random.normal(keys[1], (1, 1, dim), jnp.float32)
    initial_slots = (slots_mu + jnp.abs(slots_sigma)
                     * jax.random.normal(keys[2], (1, num_slots, dim), jnp.float32))[0]

    lim = 1.0 / math.sqrt(dim)

    def unif(k, shape):
        return jax.random.uniform(k, shape, jnp.float32, -lim, lim)

    wk = unif(keys[3], (dim, dim))
    bk = unif(keys[4], (1, dim))
    w_ih = unif(keys[5], (3 * dim, dim))      # rows ordered [r, z, n] like nn.GRU
    w_hh = unif(keys[6], (3 * dim, dim))
    b_ih = unif(keys[7], (3 * dim,))
    b_hh = unif(keys[8], (3 * dim,))

    return dict(
        initial_slots=initial_slots,
        wk_t=wk.T, bk=bk,
        w_ih_t=w_ih.T, w_hh_t=w_hh.T,                       # packed (D, 3D), cols r|z|n
        b_ih=b_ih.reshape(1, 3 * dim), b_hh=b_hh.reshape(1, 3 * dim),
    )


def reference_forward(inputs, inputs_x, params, *, num_classes, slots_per_class,
                      iters=3, loss_status=1.0, power=1):
    """Pure-JAX mirror of the PyTorch forward (exact division), for verification."""
    B, N, D = inputs.shape
    scale = D ** (-0.5)

    k = inputs @ params['wk_t'] + params['bk']
    slots = jnp.broadcast_to(params['initial_slots'][None],
                             (B,) + params['initial_slots'].shape)
    attn = None
    updates = None
    for _ in range(iters):
        slots_prev = slots
        dots = jnp.einsum('bid,bjd->bij', slots, k) * scale
        dots = dots / jnp.sum(dots, 2, keepdims=True) * jnp.sum(dots, (1, 2), keepdims=True)
        attn = jax.nn.sigmoid(dots)
        updates = jnp.einsum('bjd,bij->bid', inputs_x, attn) / D
        gi = updates @ params['w_ih_t'] + params['b_ih']
        gh = slots_prev @ params['w_hh_t'] + params['b_hh']
        r = jax.nn.sigmoid(gi[..., :D] + gh[..., :D])
        z = jax.nn.sigmoid(gi[..., D:2 * D] + gh[..., D:2 * D])
        n_g = jnp.tanh(gi[..., 2 * D:] + r * gh[..., 2 * D:])
        slots = (1.0 - z) * n_g + z * slots_prev

    if slots_per_class > 1:
        updates = updates.reshape(B, num_classes, slots_per_class, D).sum(2)
    attn_relu = jnp.maximum(attn, 0.0)
    slot_loss = jnp.sum(attn_relu) / (B * attn.shape[1] * attn.shape[2])
    return loss_status * jnp.sum(updates, axis=2), slot_loss ** power


if __name__ == "__main__":
    # small shapes consistent with the module: B=2, N=64 (8x8 spatial), D=32
    B, N, D = 2, 64, 32
    num_classes, slots_per_class, iters = 4, 2, 3
    num_slots = num_classes * slots_per_class

    key = jax.random.PRNGKey(0)
    k_in, k_inx, k_par = jax.random.split(key, 3)
    inputs = jax.random.normal(k_in, (B, N, D), jnp.float32)
    inputs_x = jax.random.normal(k_inx, (B, N, D), jnp.float32)
    params = init_params(k_par, D, num_slots)

    out, slot_loss = slot_attention_forward(
        inputs, inputs_x, params,
        num_classes=num_classes, slots_per_class=slots_per_class,
        iters=iters, loss_status=1.0, power=1)
    jax.block_until_ready((out, slot_loss))

    ref_out, ref_loss = reference_forward(
        inputs, inputs_x, params,
        num_classes=num_classes, slots_per_class=slots_per_class,
        iters=iters, loss_status=1.0, power=1)

    assert out.shape == (B, num_classes)
    # Tolerance accounts for the EUP approximate reciprocal in the row_sum division.
    assert jnp.allclose(out, ref_out, atol=2e-2, rtol=2e-2), (out, ref_out)
    assert jnp.allclose(slot_loss, ref_loss, atol=2e-3, rtol=2e-3), (slot_loss, ref_loss)

    # bf16 MXU-operand variant (v6e / v7x fast path); f32 accumulation + f32 elementwise.
    # The module's eps-free row_sum renormalisation can amplify low-precision rounding,
    # so this is a compile/run + finiteness smoke check rather than a tight comparison.
    out_bf16, loss_bf16 = slot_attention_forward(
        inputs, inputs_x, params,
        num_classes=num_classes, slots_per_class=slots_per_class,
        iters=iters, loss_status=1.0, power=1, mxu_dtype=jnp.bfloat16)
    jax.block_until_ready((out_bf16, loss_bf16))
    assert out_bf16.shape == (B, num_classes)
    assert bool(jnp.all(jnp.isfinite(out_bf16))) and bool(jnp.isfinite(loss_bf16))

    # TODO(synk): the `vis=True` branch (PIL image dump of per-slot attention maps) is
    # host-side I/O and has no Pallas equivalent; it is intentionally omitted.
    print("KERNEL_OK")
</pallas_src>

<mosaic_0001>
module attributes {stable_mosaic.version = 11 : i64} {
  func.func @kernel(%arg0: memref<128x32xf32, #tpu.memory_space<vmem>>, %arg1: memref<2x64x32xf32, #tpu.memory_space<vmem>>, %arg2: memref<8x32xf32, #tpu.memory_space<vmem>>, %arg3: memref<32x32xf32, #tpu.memory_space<vmem>>, %arg4: memref<1x32xf32, #tpu.memory_space<vmem>>, %arg5: memref<32x96xf32, #tpu.memory_space<vmem>>, %arg6: memref<32x96xf32, #tpu.memory_space<vmem>>, %arg7: memref<1x96xf32, #tpu.memory_space<vmem>>, %arg8: memref<1x96xf32, #tpu.memory_space<vmem>>, %arg9: memref<2x4xf32, #tpu.memory_space<vmem>>, %arg10: memref<1x1xf32, #tpu.memory_space<vmem>>) attributes {dimension_semantics = [], scalar_prefetch = 0 : i64, scratch_operands = 0 : i64, tpu.core_type = #tpu.core_type<tc>} {
    %c0 = arith.constant 0 : index
    %c0_0 = arith.constant 0 : index
    %c0_1 = arith.constant 0 : index
    %0 = vector.load %arg1[%c0, %c0_0, %c0_1] : memref<2x64x32xf32, #tpu.memory_space<vmem>>, vector<2x64x32xf32>
    %c0_2 = arith.constant 0 : index
    %c0_3 = arith.constant 0 : index
    %1 = vector.load %arg5[%c0_2, %c0_3] : memref<32x96xf32, #tpu.memory_space<vmem>>, vector<32x96xf32>
    %c0_4 = arith.constant 0 : index
    %c0_5 = arith.constant 0 : index
    %2 = vector.load %arg6[%c0_4, %c0_5] : memref<32x96xf32, #tpu.memory_space<vmem>>, vector<32x96xf32>
    %c0_6 = arith.constant 0 : index
    %c0_7 = arith.constant 0 : index
    %3 = vector.load %arg7[%c0_6, %c0_7] : memref<1x96xf32, #tpu.memory_space<vmem>>, vector<1x96xf32>
    %4 = vector.shape_cast %3 : vector<1x96xf32> to vector<1x96xf32>
    %5 = vector.broadcast %4 : vector<1x96xf32> to vector<16x96xf32>
    %c0_8 = arith.constant 0 : index
    %c0_9 = arith.constant 0 : index
    %6 = vector.load %arg8[%c0_8, %c0_9] : memref<1x96xf32, #tpu.memory_space<vmem>>, vector<1x96xf32>
    %7 = vector.shape_cast %6 : vector<1x96xf32> to vector<1x96xf32>
    %8 = vector.broadcast %7 : vector<1x96xf32> to vector<16x96xf32>
    %c0_10 = arith.constant 0 : index
    %c0_11 = arith.constant 0 : index
    %9 = vector.load %arg0[%c0_10, %c0_11] : memref<128x32xf32, #tpu.memory_space<vmem>>, vector<128x32xf32>
    %c0_12 = arith.constant 0 : index
    %c0_13 = arith.constant 0 : index
    %10 = vector.load %arg3[%c0_12, %c0_13] : memref<32x32xf32, #tpu.memory_space<vmem>>, vector<32x32xf32>
    %cst = arith.constant dense<0.000000e+00> : vector<128x32xf32>
    %11 = tpu.matmul %9, %10, %cst {dimension_numbers = #tpu.dot_dimension_numbers<[1], [0], [0], [1], [0, 0, 1, 1], [], []>} : vector<128x32xf32>, vector<32x32xf32>, vector<128x32xf32> -> vector<128x32xf32>
    %c0_14 = arith.constant 0 : index
    %c0_15 = arith.constant 0 : index
    %12 = vector.load %arg4[%c0_14, %c0_15] : memref<1x32xf32, #tpu.memory_space<vmem>>, vector<1x32xf32>
    %13 = vector.broadcast %12 : vector<1x32xf32> to vector<128x32xf32>
    %14 = arith.addf %11, %13 : vector<128x32xf32>
    %cst_16 = arith.constant 0.176776692 : f32
    %15 = vector.broadcast %cst_16 : f32 to vector<128x32xf32>
    %16 = arith.mulf %14, %15 : vector<128x32xf32>
    %17 = vector.shape_cast %16 : vector<128x32xf32> to vector<2x64x32xf32>
    %18 = tpu.transpose %17, [0, 2, 1] : vector<2x64x32xf32> -> vector<2x32x64xf32>
    %c0_17 = arith.constant 0 : index
    %c0_18 = arith.constant 0 : index
    %19 = vector.load %arg2[%c0_17, %c0_18] : memref<8x32xf32, #tpu.memory_space<vmem>>, vector<8x32xf32>
    %20 = tpu.concatenate %19, %19 in 0 : vector<8x32xf32>, vector<8x32xf32> -> vector<16x32xf32>
    %21 = vector.shape_cast %20 : vector<16x32xf32> to vector<2x8x32xf32>
    "tpu.trace_start"() <{level = 10 : i32, message = "bsd,bdn->bsn"}> : () -> ()
    %cst_19 = arith.constant dense<0.000000e+00> : vector<2x8x64xf32>
    %22 = tpu.matmul %21, %18, %cst_19 {dimension_numbers = #tpu.dot_dimension_numbers<[2], [1], [1], [2], [0, 0, 0, 1, 1, 2], [0], [0]>} : vector<2x8x32xf32>, vector<2x32x64xf32>, vector<2x8x64xf32> -> vector<2x8x64xf32>
    "tpu.trace_stop"() : () -> ()
    %cst_20 = arith.constant dense<0.000000e+00> : vector<2x8xf32>
    %23 = vector.multi_reduction <add>, %22, %cst_20 [2] : vector<2x8x64xf32> to vector<2x8xf32>
    %24 = vector.shape_cast %23 : vector<2x8xf32> to vector<2x8x1xf32>
    %cst_21 = arith.constant dense<0.000000e+00> : vector<2x1xf32>
    %25 = vector.multi_reduction <add>, %24, %cst_21 [1] : vector<2x8x1xf32> to vector<2x1xf32>
    %26 = vector.shape_cast %25 : vector<2x1xf32> to vector<2x1x1xf32>
    %27 = tpu.reciprocal %24 {approx = true} : vector<2x8x1xf32> -> vector<2x8x1xf32>
    %28 = vector.broadcast %26 : vector<2x1x1xf32> to vector<2x8x1xf32>
    %29 = arith.mulf %27, %28 : vector<2x8x1xf32>
    %30 = vector.broadcast %29 : vector<2x8x1xf32> to vector<2x8x64xf32>
    %31 = arith.mulf %22, %30 : vector<2x8x64xf32>
    %32 = arith.negf %31 : vector<2x8x64xf32>
    %33 = math.exp %32 : vector<2x8x64xf32>
    %cst_22 = arith.constant 1.000000e+00 : f32
    %34 = vector.broadcast %cst_22 : f32 to vector<2x8x64xf32>
    %35 = arith.addf %34, %33 : vector<2x8x64xf32>
    %36 = arith.divf %34, %35 : vector<2x8x64xf32>
    "tpu.trace_start"() <{level = 10 : i32, message = "bsn,bnd->bsd"}> : () -> ()
    %cst_23 = arith.constant dense<0.000000e+00> : vector<2x8x32xf32>
    %37 = tpu.matmul %36, %0, %cst_23 {dimension_numbers = #tpu.dot_dimension_numbers<[2], [1], [1], [2], [0, 0, 0, 1, 1, 2], [0], [0]>} : vector<2x8x64xf32>, vector<2x64x32xf32>, vector<2x8x32xf32> -> vector<2x8x32xf32>
    "tpu.trace_stop"() : () -> ()
    %cst_24 = arith.constant 3.125000e-02 : f32
    %38 = vector.broadcast %cst_24 : f32 to vector<2x8x32xf32>
    %39 = arith.mulf %37, %38 : vector<2x8x32xf32>
    %40 = vector.shape_cast %39 : vector<2x8x32xf32> to vector<16x32xf32>
    %cst_25 = arith.constant dense<0.000000e+00> : vector<16x96xf32>
    %41 = tpu.matmul %40, %1, %cst_25 {dimension_numbers = #tpu.dot_dimension_numbers<[1], [0], [0], [1], [0, 0, 1, 1], [], []>} : vector<16x32xf32>, vector<32x96xf32>, vector<16x96xf32> -> vector<16x96xf32>
    %42 = arith.addf %41, %5 : vector<16x96xf32>
    %cst_26 = arith.constant dense<0.000000e+00> : vector<16x96xf32>
    %43 = tpu.matmul %20, %2, %cst_26 {dimension_numbers = #tpu.dot_dimension_numbers<[1], [0], [0], [1], [0, 0, 1, 1], [], []>} : vector<16x32xf32>, vector<32x96xf32>, vector<16x96xf32> -> vector<16x96xf32>
    %44 = arith.addf %43, %8 : vector<16x96xf32>
    %45 = vector.extract_strided_slice %42 {offsets = [0, 0], sizes = [16, 32], strides = [1, 1]} : vector<16x96xf32> to vector<16x32xf32>
    %46 = vector.extract_strided_slice %44 {offsets = [0, 0], sizes = [16, 32], strides = [1, 1]} : vector<16x96xf32> to vector<16x32xf32>
    %47 = arith.addf %45, %46 : vector<16x32xf32>
    %48 = arith.negf %47 : vector<16x32xf32>
    %49 = math.exp %48 : vector<16x32xf32>
    %cst_27 = arith.constant 1.000000e+00 : f32
    %50 = vector.broadcast %cst_27 : f32 to vector<16x32xf32>
    %51 = arith.addf %50, %49 : vector<16x32xf32>
    %52 = arith.divf %50, %51 : vector<16x32xf32>
    %53 = vector.extract_strided_slice %42 {offsets = [0, 32], sizes = [16, 32], strides = [1, 1]} : vector<16x96xf32> to vector<16x32xf32>
    %54 = vector.extract_strided_slice %44 {offsets = [0, 32], sizes = [16, 32], strides = [1, 1]} : vector<16x96xf32> to vector<16x32xf32>
    %55 = arith.addf %53, %54 : vector<16x32xf32>
    %56 = arith.negf %55 : vector<16x32xf32>
    %57 = math.exp %56 : vector<16x32xf32>
    %cst_28 = arith.constant 1.000000e+00 : f32
    %58 = vector.broadcast %cst_28 : f32 to vector<16x32xf32>
    %59 = arith.addf %58, %57 : vector<16x32xf32>
    %60 = arith.divf %58, %59 : vector<16x32xf32>
    %61 = vector.extract_strided_slice %42 {offsets = [0, 64], sizes = [16, 32], strides = [1, 1]} : vector<16x96xf32> to vector<16x32xf32>
    %62 = vector.extract_strided_slice %44 {offsets = [0, 64], sizes = [16, 32], strides = [1, 1]} : vector<16x96xf32> to vector<16x32xf32>
    %63 = arith.mulf %52, %62 : vector<16x32xf32>
    %64 = arith.addf %61, %63 : vector<16x32xf32>
    %65 = math.tanh %64 : vector<16x32xf32>
    %cst_29 = arith.constant 1.000000e+00 : f32
    %66 = vector.broadcast %cst_29 : f32 to vector<16x32xf32>
    %67 = arith.subf %66, %60 : vector<16x32xf32>
    %68 = arith.mulf %67, %65 : vector<16x32xf32>
    %69 = arith.mulf %60, %20 : vector<16x32xf32>
    %70 = arith.addf %68, %69 : vector<16x32xf32>
    %71 = vector.shape_cast %70 : vector<16x32xf32> to vector<2x8x32xf32>
    "tpu.trace_start"() <{level = 10 : i32, message = "bsd,bdn->bsn"}> : () -> ()
    %cst_30 = arith.constant dense<0.000000e+00> : vector<2x8x64xf32>
    %72 = tpu.matmul %71, %18, %cst_30 {dimension_numbers = #tpu.dot_dimension_numbers<[2], [1], [1], [2], [0, 0, 0, 1, 1, 2], [0], [0]>} : vector<2x8x32xf32>, vector<2x32x64xf32>, vector<2x8x64xf32> -> vector<2x8x64xf32>
    "tpu.trace_stop"() : () -> ()
    %cst_31 = arith.constant dense<0.000000e+00> : vector<2x8xf32>
    %73 = vector.multi_reduction <add>, %72, %cst_31 [2] : vector<2x8x64xf32> to vector<2x8xf32>
    %74 = vector.shape_cast %73 : vector<2x8xf32> to vector<2x8x1xf32>
    %cst_32 = arith.constant dense<0.000000e+00> : vector<2x1xf32>
    %75 = vector.multi_reduction <add>, %74, %cst_32 [1] : vector<2x8x1xf32> to vector<2x1xf32>
    %76 = vector.shape_cast %75 : vector<2x1xf32> to vector<2x1x1xf32>
    %77 = tpu.reciprocal %74 {approx = true} : vector<2x8x1xf32> -> vector<2x8x1xf32>
    %78 = vector.broadcast %76 : vector<2x1x1xf32> to vector<2x8x1xf32>
    %79 = arith.mulf %77, %78 : vector<2x8x1xf32>
    %80 = vector.broadcast %79 : vector<2x8x1xf32> to vector<2x8x64xf32>
    %81 = arith.mulf %72, %80 : vector<2x8x64xf32>
    %82 = arith.negf %81 : vector<2x8x64xf32>
    %83 = math.exp %82 : vector<2x8x64xf32>
    %cst_33 = arith.constant 1.000000e+00 : f32
    %84 = vector.broadcast %cst_33 : f32 to vector<2x8x64xf32>
    %85 = arith.addf %84, %83 : vector<2x8x64xf32>
    %86 = arith.divf %84, %85 : vector<2x8x64xf32>
    "tpu.trace_start"() <{level = 10 : i32, message = "bsn,bnd->bsd"}> : () -> ()
    %cst_34 = arith.constant dense<0.000000e+00> : vector<2x8x32xf32>
    %87 = tpu.matmul %86, %0, %cst_34 {dimension_numbers = #tpu.dot_dimension_numbers<[2], [1], [1], [2], [0, 0, 0, 1, 1, 2], [0], [0]>} : vector<2x8x64xf32>, vector<2x64x32xf32>, vector<2x8x32xf32> -> vector<2x8x32xf32>
    "tpu.trace_stop"() : () -> ()
    %cst_35 = arith.constant 3.125000e-02 : f32
    %88 = vector.broadcast %cst_35 : f32 to vector<2x8x32xf32>
    %89 = arith.mulf %87, %88 : vector<2x8x32xf32>
    %90 = vector.shape_cast %89 : vector<2x8x32xf32> to vector<16x32xf32>
    %cst_36 = arith.constant dense<0.000000e+00> : vector<16x96xf32>
    %91 = tpu.matmul %90, %1, %cst_36 {dimension_numbers = #tpu.dot_dimension_numbers<[1], [0], [0], [1], [0, 0, 1, 1], [], []>} : vector<16x32xf32>, vector<32x96xf32>, vector<16x96xf32> -> vector<16x96xf32>
    %92 = arith.addf %91, %5 : vector<16x96xf32>
    %cst_37 = arith.constant dense<0.000000e+00> : vector<16x96xf32>
    %93 = tpu.matmul %70, %2, %cst_37 {dimension_numbers = #tpu.dot_dimension_numbers<[1], [0], [0], [1], [0, 0, 1, 1], [], []>} : vector<16x32xf32>, vector<32x96xf32>, vector<16x96xf32> -> vector<16x96xf32>
    %94 = arith.addf %93, %8 : vector<16x96xf32>
    %95 = vector.extract_strided_slice %92 {offsets = [0, 0], sizes = [16, 32], strides = [1, 1]} : vector<16x96xf32> to vector<16x32xf32>
    %96 = vector.extract_strided_slice %94 {offsets = [0, 0], sizes = [16, 32], strides = [1, 1]} : vector<16x96xf32> to vector<16x32xf32>
    %97 = arith.addf %95, %96 : vector<16x32xf32>
    %98 = arith.negf %97 : vector<16x32xf32>
    %99 = math.exp %98 : vector<16x32xf32>
    %cst_38 = arith.constant 1.000000e+00 : f32
    %100 = vector.broadcast %cst_38 : f32 to vector<16x32xf32>
    %101 = arith.addf %100, %99 : vector<16x32xf32>
    %102 = arith.divf %100, %101 : vector<16x32xf32>
    %103 = vector.extract_strided_slice %92 {offsets = [0, 32], sizes = [16, 32], strides = [1, 1]} : vector<16x96xf32> to vector<16x32xf32>
    %104 = vector.extract_strided_slice %94 {offsets = [0, 32], sizes = [16, 32], strides = [1, 1]} : vector<16x96xf32> to vector<16x32xf32>
    %105 = arith.addf %103, %104 : vector<16x32xf32>
    %106 = arith.negf %105 : vector<16x32xf32>
    %107 = math.exp %106 : vector<16x32xf32>
    %cst_39 = arith.constant 1.000000e+00 : f32
    %108 = vector.broadcast %cst_39 : f32 to vector<16x32xf32>
    %109 = arith.addf %108, %107 : vector<16x32xf32>
    %110 = arith.divf %108, %109 : vector<16x32xf32>
    %111 = vector.extract_strided_slice %92 {offsets = [0, 64], sizes = [16, 32], strides = [1, 1]} : vector<16x96xf32> to vector<16x32xf32>
    %112 = vector.extract_strided_slice %94 {offsets = [0, 64], sizes = [16, 32], strides = [1, 1]} : vector<16x96xf32> to vector<16x32xf32>
    %113 = arith.mulf %102, %112 : vector<16x32xf32>
    %114 = arith.addf %111, %113 : vector<16x32xf32>
    %115 = math.tanh %114 : vector<16x32xf32>
    %cst_40 = arith.constant 1.000000e+00 : f32
    %116 = vector.broadcast %cst_40 : f32 to vector<16x32xf32>
    %117 = arith.subf %116, %110 : vector<16x32xf32>
    %118 = arith.mulf %117, %115 : vector<16x32xf32>
    %119 = arith.mulf %110, %70 : vector<16x32xf32>
    %120 = arith.addf %118, %119 : vector<16x32xf32>
    %121 = vector.shape_cast %120 : vector<16x32xf32> to vector<2x8x32xf32>
    "tpu.trace_start"() <{level = 10 : i32, message = "bsd,bdn->bsn"}> : () -> ()
    %cst_41 = arith.constant dense<0.000000e+00> : vector<2x8x64xf32>
    %122 = tpu.matmul %121, %18, %cst_41 {dimension_numbers = #tpu.dot_dimension_numbers<[2], [1], [1], [2], [0, 0, 0, 1, 1, 2], [0], [0]>} : vector<2x8x32xf32>, vector<2x32x64xf32>, vector<2x8x64xf32> -> vector<2x8x64xf32>
    "tpu.trace_stop"() : () -> ()
    %cst_42 = arith.constant dense<0.000000e+00> : vector<2x8xf32>
    %123 = vector.multi_reduction <add>, %122, %cst_42 [2] : vector<2x8x64xf32> to vector<2x8xf32>
    %124 = vector.shape_cast %123 : vector<2x8xf32> to vector<2x8x1xf32>
    %cst_43 = arith.constant dense<0.000000e+00> : vector<2x1xf32>
    %125 = vector.multi_reduction <add>, %124, %cst_43 [1] : vector<2x8x1xf32> to vector<2x1xf32>
    %126 = vector.shape_cast %125 : vector<2x1xf32> to vector<2x1x1xf32>
    %127 = tpu.reciprocal %124 {approx = true} : vector<2x8x1xf32> -> vector<2x8x1xf32>
    %128 = vector.broadcast %126 : vector<2x1x1xf32> to vector<2x8x1xf32>
    %129 = arith.mulf %127, %128 : vector<2x8x1xf32>
    %130 = vector.broadcast %129 : vector<2x8x1xf32> to vector<2x8x64xf32>
    %131 = arith.mulf %122, %130 : vector<2x8x64xf32>
    %132 = arith.negf %131 : vector<2x8x64xf32>
    %133 = math.exp %132 : vector<2x8x64xf32>
    %cst_44 = arith.constant 1.000000e+00 : f32
    %134 = vector.broadcast %cst_44 : f32 to vector<2x8x64xf32>
    %135 = arith.addf %134, %133 : vector<2x8x64xf32>
    %136 = arith.divf %134, %135 : vector<2x8x64xf32>
    "tpu.trace_start"() <{level = 10 : i32, message = "bsn,bnd->bsd"}> : () -> ()
    %cst_45 = arith.constant dense<0.000000e+00> : vector<2x8x32xf32>
    %137 = tpu.matmul %136, %0, %cst_45 {dimension_numbers = #tpu.dot_dimension_numbers<[2], [1], [1], [2], [0, 0, 0, 1, 1, 2], [0], [0]>} : vector<2x8x64xf32>, vector<2x64x32xf32>, vector<2x8x32xf32> -> vector<2x8x32xf32>
    "tpu.trace_stop"() : () -> ()
    %cst_46 = arith.constant 3.125000e-02 : f32
    %138 = vector.broadcast %cst_46 : f32 to vector<2x8x32xf32>
    %139 = arith.mulf %137, %138 : vector<2x8x32xf32>
    %cst_47 = arith.constant dense<0.000000e+00> : vector<2x8xf32>
    %140 = vector.multi_reduction <add>, %139, %cst_47 [2] : vector<2x8x32xf32> to vector<2x8xf32>
    %141 = vector.extract_strided_slice %140 {offsets = [0, 0], sizes = [2, 2], strides = [1, 1]} : vector<2x8xf32> to vector<2x2xf32>
    %cst_48 = arith.constant dense<0.000000e+00> : vector<2xf32>
    %142 = vector.multi_reduction <add>, %141, %cst_48 [1] : vector<2x2xf32> to vector<2xf32>
    %143 = vector.shape_cast %142 : vector<2xf32> to vector<2x1xf32>
    %144 = vector.extract_strided_slice %140 {offsets = [0, 2], sizes = [2, 2], strides = [1, 1]} : vector<2x8xf32> to vector<2x2xf32>
    %cst_49 = arith.constant dense<0.000000e+00> : vector<2xf32>
    %145 = vector.multi_reduction <add>, %144, %cst_49 [1] : vector<2x2xf32> to vector<2xf32>
    %146 = vector.shape_cast %145 : vector<2xf32> to vector<2x1xf32>
    %147 = vector.extract_strided_slice %140 {offsets = [0, 4], sizes = [2, 2], strides = [1, 1]} : vector<2x8xf32> to vector<2x2xf32>
    %cst_50 = arith.constant dense<0.000000e+00> : vector<2xf32>
    %148 = vector.multi_reduction <add>, %147, %cst_50 [1] : vector<2x2xf32> to vector<2xf32>
    %149 = vector.shape_cast %148 : vector<2xf32> to vector<2x1xf32>
    %150 = vector.extract_strided_slice %140 {offsets = [0, 6], sizes = [2, 2], strides = [1, 1]} : vector<2x8xf32> to vector<2x2xf32>
    %cst_51 = arith.constant dense<0.000000e+00> : vector<2xf32>
    %151 = vector.multi_reduction <add>, %150, %cst_51 [1] : vector<2x2xf32> to vector<2xf32>
    %152 = vector.shape_cast %151 : vector<2xf32> to vector<2x1xf32>
    %153 = tpu.concatenate %143, %146, %149, %152 in 1 : vector<2x1xf32>, vector<2x1xf32>, vector<2x1xf32>, vector<2x1xf32> -> vector<2x4xf32>
    %cst_52 = arith.constant 1.000000e+00 : f32
    %154 = vector.broadcast %cst_52 : f32 to vector<2x4xf32>
    %155 = arith.mulf %154, %153 : vector<2x4xf32>
    %c0_53 = arith.constant 0 : index
    %c0_54 = arith.constant 0 : index
    %156 = vector.load %arg9[%c0_53, %c0_54] : memref<2x4xf32, #tpu.memory_space<vmem>>, vector<2x4xf32>
    tpu.vector_store %arg9[%c0_53, %c0_54], %155 {strides = array<i32>} : memref<2x4xf32, #tpu.memory_space<vmem>>, vector<2x4xf32>,
    %cst_55 = arith.constant 0.000000e+00 : f32
    %157 = vector.broadcast %cst_55 : f32 to vector<2x8x64xf32>
    %158 = arith.maximumf %136, %157 : vector<2x8x64xf32>
    %159 = vector.shape_cast %158 : vector<2x8x64xf32> to vector<1x2x8x64xf32>
    %cst_56 = arith.constant dense<0.000000e+00> : vector<1xf32>
    %160 = vector.multi_reduction <add>, %159, %cst_56 [1, 2, 3] : vector<1x2x8x64xf32> to vector<1xf32>
    %161 = vector.shape_cast %160 : vector<1xf32> to vector<1x1x1x1xf32>
    %162 = vector.extract %161[0, 0, 0, 0] : f32 from vector<1x1x1x1xf32>
    %cst_57 = arith.constant 9.765625E-4 : f32
    %163 = arith.mulf %162, %cst_57 : f32
    %164 = vector.broadcast %163 : f32 to vector<1x1xf32>
    %c0_58 = arith.constant 0 : index
    %c0_59 = arith.constant 0 : index
    %165 = vector.load %arg10[%c0_58, %c0_59] : memref<1x1xf32, #tpu.memory_space<vmem>>, vector<1x1xf32>
    tpu.vector_store %arg10[%c0_58, %c0_59], %164 {strides = array<i32>} : memref<1x1xf32, #tpu.memory_space<vmem>>, vector<1x1xf32>,
    return
  }
}

</mosaic_0001>

<bundles_post_ra>
// kernel: tpu_custom_call.1
= control target key start
LH: loop header
LB: loop body
LE: loop exit
PB: predicated region body
PF: predicated region fallthrough
CT: control target
= control target key end

     0   :  { %16 = vsyncpa [#allocation3], 0  ;;  %vm101_vm0 = vcmask 261120   ;;  %s3341_s0 = inlined_call_operand.vmem [shape: f32[128,32], index: 0, kind: input, shape index: {}]   ;;  %s3342_s1 = inlined_call_operand.vmem [shape: f32[2,64,32], index: 1, kind: input, shape index: {}]   ;;  %s3343_s2 = inlined_call_operand.vmem [shape: f32[8,32], index: 2, kind: input, shape index: {}]   ;;  %s3344_s3 = inlined_call_operand.vmem [shape: f32[32,32], index: 3, kind: input, shape index: {}]   ;;  %s3345_s4 = inlined_call_operand.vmem [shape: f32[1,32], index: 4, kind: input, shape index: {}]   ;;  %s3346_s5 = inlined_call_operand.vmem [shape: f32[32,96], index: 5, kind: input, shape index: {}]   ;;  %s3347_s6 = inlined_call_operand.vmem [shape: f32[32,96], index: 6, kind: input, shape index: {}]   ;;  %s3348_s7 = inlined_call_operand.vmem [shape: f32[1,96], index: 7, kind: input, shape index: {}]   ;;  %s3349_s8 = inlined_call_operand.vmem [shape: f32[1,96], index: 8, kind: input, shape index: {}]   ;;  %s3350_s9 = inlined_call_operand.hbm [shape: f32[2,4], index: 9, kind: output, shape index: {0}]   ;;  %s3351_s10 = inlined_call_operand.hbm [shape: f32[1,1], index: 10, kind: output, shape index: {1}]  }
   0x1   :  { %v90_v0 = vld [vmem:[%s3344_s3] sm:$0xff]  ;;  %v91_v1 = vld [vmem:[%s3344_s3 + $0x8] sm:$0xff]  ;;  %v92_v2 = vld [vmem:[%s3344_s3 + $0x10] sm:$0xff] }
   0x2   :  { %v2449_v3 = vpack.c.bf16 %v91_v1, %v90_v0  ;;  %v93_v4 = vld [vmem:[%s3344_s3 + $0x18] sm:$0xff]  ;;  %v74_v5 = vld [vmem:[%s3341_s0] sm:$0xff] }
   0x3   :  { %v2453_v6 = vpack.c.bf16 %v93_v4, %v92_v2  ;;  %2153 = vmatprep.mubr.msk.f32.mxu0 %vm101_vm0, %v74_v5 }
   0x4   :  { %2450 = vmatprep.subr.bf16.mxu0 %v2449_v3 }
   0x5   :  { %2452 = vmatpush3.bf16.msra.mxu0 %v2449_v3 }
   0x6   :  { %2454 = vmatprep.subr.bf16.mxu0 %v2453_v6 }
   0x7   :  { %17 = vsyncpa [#allocation5], 0  ;;  %v75_v7 = vld [vmem:[%s3341_s0 + $0x8] sm:$0xff]  ;;  %v76_v8 = vld [vmem:[%s3341_s0 + $0x10] sm:$0xff]  ;;  %v2775_v22 = vmov 0.0|0.0   ;;  %vm2776_vm1 = vmmov 0  }
   0x8   :  { %v77_v9 = vld [vmem:[%s3341_s0 + $0x18] sm:$0xff]  ;;  %v78_v10 = vld [vmem:[%s3341_s0 + $0x20] sm:$0xff]  ;;  %v79_v11 = vld [vmem:[%s3341_s0 + $0x28] sm:$0xff]  ;;  %2457 = vmatprep.subr.bf16.mxu1 %v2775_v22  ;;  %v2777_v23 = vmov 0.0   ;;  %vm503_vm3 = vcmask 523264   ;;  %s2780_s13 = smov 96  }
   0x9   :  { %2456 = vmatpush3.bf16.msra.mxu0 %v2453_v6  ;;  %v80_v12 = vld [vmem:[%s3341_s0 + $0x30] sm:$0xff]  ;;  %v81_v13 = vld [vmem:[%s3341_s0 + $0x38] sm:$0xff]  ;;  %v82_v14 = vld [vmem:[%s3341_s0 + $0x40] sm:$0xff]  ;;  %2193 = vmatprep.mubr.msk.f32.mxu1 %vm2776_vm1, %v2777_v23  ;;  %vm1866_vm4 = vcmask 0   ;;  %vm1793_vm5 = vcmask 1041409   ;;  %vm1796_vm6 = vcmask 9216  }
   0xa   :  { %v83_v15 = vld [vmem:[%s3341_s0 + $0x48] sm:$0xff]  ;;  %v84_v16 = vld [vmem:[%s3341_s0 + $0x50] sm:$0xff]  ;;  %v85_v17 = vld [vmem:[%s3341_s0 + $0x58] sm:$0xff]  ;;  %2473 = vmatprep.subr.bf16.mxu0 %v2775_v22  ;;  %s2781_s16 = smov [#allocation4]  }
   0xb   :  { %v86_v18 = vld [vmem:[%s3341_s0 + $0x60] sm:$0xff]  ;;  %v87_v19 = vld [vmem:[%s3341_s0 + $0x68] sm:$0xff]  ;;  %v88_v20 = vld [vmem:[%s3341_s0 + $0x70] sm:$0xff]  ;;  %s1884_s17 = sshll.u32 %s2781_s16, 4  ;;  %s1885_s17 = int_to_ptr.vmem [resolvable:$true] %s1884_s17 }
   0xc   :  { %2154 = vmatmul.mubr.msk.f32.vlgmr.msra.gmra.mrb[0].mxu0 %vm101_vm0, %v75_v7  ;;  %v89_v21 = vld [vmem:[%s3341_s0 + $0x78] sm:$0xff]  ;;  %v1898_v24 = vld [vmem:[%s3345_s4] ss:$0 sm:$0xff]  ;;  %vm2925_vm2 = vmpackc.low %vm101_vm0, %vm101_vm0  ;;  %s2778_s4 = smov 64   ;;  %s2727_s18 = scalar_lea.vmem %s1885_s17, 16 }
   0xd   :  { %2156 = vmatprep.mubr.msk.f32.mxu0 %vm101_vm0, %v76_v8  ;;  %p2728_p0 = scmp.ne.s32.totalorder %s1885_s17, %s2727_s18  ;;  %s2731_s19 = scalar_lea.vmem %s1885_s17, 32 }
   0xe   :  { %p2732_p1 = scmp.lt.s32.totalorder %s1885_s17, %s1885_s17  ;;  %p2733_p2 = scmp.lt.s32.totalorder %s2731_s19, %s2727_s18 }
  0x10   :  { %2157 = vmatmul.mubr.msk.f32.gmra.mrb[2].mxu0 %vm101_vm0, %v77_v9  ;;  %p2734_p3 = por %p2733_p2, %p2732_p1 }
  0x11   :  { %2159 = vmatprep.mubr.msk.f32.mxu0 %vm101_vm0, %v78_v10 }
  0x12   :  { %p2735_p4 = pnand %p2734_p3, %p2728_p0 }
  0x14   :  { %2160 = vmatmul.mubr.msk.f32.gmra.mrb[4].mxu0 %vm101_vm0, %v79_v11 }
  0x15   :  { %2162 = vmatprep.mubr.msk.f32.mxu0 %vm101_vm0, %v80_v12 }
  0x18   :  { %2163 = vmatmul.mubr.msk.f32.gmra.mrb[6].mxu0 %vm101_vm0, %v81_v13 }
  0x19   :  { %2165 = vmatprep.mubr.msk.f32.mxu0 %vm101_vm0, %v82_v14 }
  0x1c   :  { %2166 = vmatmul.mubr.msk.f32.gmra.mrb[8].mxu0 %vm101_vm0, %v83_v15 }
  0x1d   :  { %2168 = vmatprep.mubr.msk.f32.mxu0 %vm101_vm0, %v84_v16 }
  0x20   :  { %2169 = vmatmul.mubr.msk.f32.gmra.mrb[10].mxu0 %vm101_vm0, %v85_v17 }
  0x21   :  { %2171 = vmatprep.mubr.msk.f32.mxu0 %vm101_vm0, %v86_v18  ;;  %v2972_v18 = vld [vmem:[%s3343_s2] sm:$0xff] }
  0x24   :  { %2172 = vmatmul.mubr.msk.f32.gmra.mrb[12].mxu0 %vm101_vm0, %v87_v19 }
  0x25   :  { %2174 = vmatprep.mubr.msk.f32.mxu0 %vm101_vm0, %v88_v20 }
  0x28   :  { %2175 = vmatmul.mubr.msk.f32.gmra.mrb[14].mxu0 %vm101_vm0, %v89_v21 }
  0x29   :  { %2212 = vmatprep.mubr.msk.f32.mxu0 %vm2776_vm1, %v2777_v23 }
  0xdf   :  { %v2155_v25 = vpop.f32.mrb[0].mxu0 }
  0xe0   :  { %v222_v26 = vadd.f32 %v2155_v25, %v1898_v24  ;;  %v216_v27 = vpop.f32.mrb[1].mxu0 }
  0xe1   :  { %v217_v28 = vadd.f32 %v1898_v24, %v216_v27  ;;  %v36_v27 = vld [vmem:[%s3342_s1] sm:$0xff] }
  0xe2   :  { %v296_v29 = vmul.f32 0.17677669, %v222_v26 }
  0xe3   :  { %v295_v30 = vmul.f32 0.17677669, %v217_v28  ;;  %v2158_v31 = vpop.f32.mrb[2].mxu0  ;;  %v37_v28 = vld [vmem:[%s3342_s1 + $0x8] sm:$0xff] }
  0xe4   :  { %v232_v32 = vadd.f32 %v2158_v31, %v1898_v24  ;;  %v226_v33 = vpop.f32.mrb[3].mxu0  ;;  %v39_v31 = vld [vmem:[%s3342_s1 + $0x18] sm:$0xff] }
  0xe5   :  { %v2929_v35 = vpack.c.bf16 %v296_v29, %v295_v30  ;;  %v227_v36 = vadd.f32 %v1898_v24, %v226_v33  ;;  %v3001_v29 = vpack.c.bf16 %v37_v28, %v36_v27  ;;  %v38_v30 = vld [vmem:[%s3342_s1 + $0x10] sm:$0xff]  ;;  %v40_v33 = vld [vmem:[%s3342_s1 + $0x20] sm:$0xff] }
  0xe6   :  { %v298_v37 = vmul.f32 0.17677669, %v232_v32  ;;  %v3011_v32 = vpack.c.bf16 %v39_v31, %v38_v30  ;;  %v58_v31 = vld [vmem:[%s3347_s6 + $0x10] sm:$0xff] }
  0xe7   :  { %v297_v38 = vmul.f32 0.17677669, %v227_v36  ;;  %v2161_v39 = vpop.f32.mrb[4].mxu0  ;;  %2460 = vmatpush3.bf16.xpose.msk.msra.mxu1 %vm2925_vm2, %v2929_v35  ;;  %v41_v36 = vld [vmem:[%s3342_s1 + $0x28] sm:$0xff] }
  0xe8   :  { %v242_v40 = vadd.f32 %v2161_v39, %v1898_v24  ;;  %v236_v41 = vpop.f32.mrb[5].mxu0  ;;  %2461 = vmatprep.subr.bf16.mxu1 %v2775_v22  ;;  %v43_v39 = vld [vmem:[%s3342_s1 + $0x38] sm:$0xff] }
  0xe9   :  { %v2935_v42 = vpack.c.bf16 %v298_v37, %v297_v38  ;;  %v237_v43 = vadd.f32 %v1898_v24, %v236_v41  ;;  %v3021_v37 = vpack.c.bf16 %v41_v36, %v40_v33  ;;  %v42_v38 = vld [vmem:[%s3342_s1 + $0x30] sm:$0xff]  ;;  %v44_v41 = vld [vmem:[%s3342_s1 + $0x40] sm:$0xff]  ;;  %v59_v33 = vld [vmem:[%s3347_s6 + $0x18] sm:$0xff] }
  0xea   :  { %v300_v44 = vmul.f32 0.17677669, %v242_v40  ;;  %v3031_v40 = vpack.c.bf16 %v43_v39, %v42_v38  ;;  %v3090_v36 = vpack.c.bf16 %v59_v33, %v58_v31  ;;  %v52_v38 = vld [vmem:[%s3346_s5] sm:$0xff]  ;;  %v53_v39 = vld [vmem:[%s3346_s5 + $0x8] sm:$0xff] }
  0xeb   :  { %v299_v45 = vmul.f32 0.17677669, %v237_v43  ;;  %v2164_v46 = vpop.f32.mrb[6].mxu0  ;;  %v45_v43 = vld [vmem:[%s3342_s1 + $0x48] sm:$0xff] }
  0xec   :  { %v252_v47 = vadd.f32 %v2164_v46, %v1898_v24  ;;  %v246_v48 = vpop.f32.mrb[7].mxu0  ;;  %v47_v46 = vld [vmem:[%s3342_s1 + $0x58] sm:$0xff] }
  0xed   :  { %v2937_v49 = vpack.c.bf16 %v300_v44, %v299_v45  ;;  %v247_v50 = vadd.f32 %v1898_v24, %v246_v48  ;;  %v3040_v44 = vpack.c.bf16 %v45_v43, %v44_v41  ;;  %v46_v45 = vld [vmem:[%s3342_s1 + $0x50] sm:$0xff]  ;;  %v48_v48 = vld [vmem:[%s3342_s1 + $0x60] sm:$0xff]  ;;  %v3128_v43 = vpack.c.bf16 %v53_v39, %v52_v38 }
  0xee   :  { %v302_v51 = vmul.f32 0.17677669, %v252_v47  ;;  %v3050_v47 = vpack.c.bf16 %v47_v46, %v46_v45  ;;  %v54_v41 = vld [vmem:[%s3346_s5 + $0x10] sm:$0xff]  ;;  %v55_v45 = vld [vmem:[%s3346_s5 + $0x18] sm:$0xff] }
  0xef   :  { %v301_v52 = vmul.f32 0.17677669, %v247_v50  ;;  %v2167_v53 = vpop.f32.mrb[8].mxu0  ;;  %2464 = vmatpush3.bf16.xpose.msk.msra.mxu1 %vm2925_vm2, %v2935_v42  ;;  %v49_v50 = vld [vmem:[%s3342_s1 + $0x68] sm:$0xff]  ;;  %v3133_v46 = vpack.c.bf16 %v55_v45, %v54_v41 }
  0xf0   :  { %v262_v54 = vadd.f32 %v2167_v53, %v1898_v24  ;;  %v256_v55 = vpop.f32.mrb[9].mxu0  ;;  %2465 = vmatprep.subr.bf16.mxu1 %v2775_v22  ;;  %v51_v53 = vld [vmem:[%s3342_s1 + $0x78] sm:$0xff] }
  0xf1   :  { %v2943_v56 = vpack.c.bf16 %v302_v51, %v301_v52  ;;  %v257_v57 = vadd.f32 %v1898_v24, %v256_v55  ;;  %v50_v51 = vld [vmem:[%s3342_s1 + $0x70] sm:$0xff]  ;;  %v3063_v52 = vpack.c.bf16 %v49_v50, %v48_v48  ;;  %v57_v55 = vld [vmem:[%s3347_s6 + $0x8] sm:$0xff] }
  0xf2   :  { %v304_v58 = vmul.f32 0.17677669, %v262_v54  ;;  %v56_v54 = vld [vmem:[%s3347_s6] sm:$0xff] }
  0xf3   :  { %v303_v59 = vmul.f32 0.17677669, %v257_v57  ;;  %v2170_v60 = vpop.f32.mrb[10].mxu0  ;;  %v3075_v57 = vpack.c.bf16 %v51_v53, %v50_v51 }
  0xf4   :  { %v272_v61 = vadd.f32 %v2170_v60, %v1898_v24  ;;  %v266_v62 = vpop.f32.mrb[11].mxu0 }
  0xf5   :  { %v2945_v63 = vpack.c.bf16 %v304_v58, %v303_v59  ;;  %v267_v0 = vadd.f32 %v1898_v24, %v266_v62  ;;  %v3078_v58 = vpack.c.bf16 %v57_v55, %v56_v54 }
  0xf6   :  { %v306_v1 = vmul.f32 0.17677669, %v272_v61 }
  0xf7   :  { %v305_v2 = vmul.f32 0.17677669, %v267_v0  ;;  %2468 = vmatpush3.bf16.xpose.msk.msra.mxu1 %vm2925_vm2, %v2937_v49  ;;  %2476 = vmatpush3.bf16.xpose.msk.msra.mxu0 %vm2925_vm2, %v2945_v63  ;;  %v2173_v3 = vpop.f32.mrb[12].mxu0 }
  0xf8   :  { %v282_v4 = vadd.f32 %v2173_v3, %v1898_v24  ;;  %2469 = vmatprep.subr.bf16.mxu1 %v2775_v22  ;;  %2477 = vmatprep.subr.bf16.mxu0 %v2775_v22  ;;  %v276_v5 = vpop.f32.mrb[13].mxu0 }
  0xf9   :  { %v2955_v6 = vpack.c.bf16 %v306_v1, %v305_v2  ;;  %v277_v7 = vadd.f32 %v1898_v24, %v276_v5 }
  0xfa   :  { %v308_v8 = vmul.f32 0.17677669, %v282_v4 }
  0xfb   :  { %v307_v9 = vmul.f32 0.17677669, %v277_v7  ;;  %v2176_v10 = vpop.f32.mrb[14].mxu0 }
  0xfc   :  { %v292_v11 = vadd.f32 %v2176_v10, %v1898_v24  ;;  %v286_v12 = vpop.f32.mrb[15].mxu0 }
  0xfd   :  { %v2957_v13 = vpack.c.bf16 %v308_v8, %v307_v9  ;;  %v287_v14 = vadd.f32 %v1898_v24, %v286_v12 }
  0xfe   :  { %v310_v15 = vmul.f32 0.17677669, %v292_v11 }
  0xff   :  { %2472 = vmatpush3.bf16.xpose.msk.msra.mxu1 %vm2925_vm2, %v2943_v56  ;;  %2480 = vmatpush3.bf16.xpose.msk.msra.mxu0 %vm2925_vm2, %v2955_v6  ;;  %v309_v16 = vmul.f32 0.17677669, %v287_v14 }
 0x100   :  { %2481 = vmatprep.subr.bf16.mxu0 %v2775_v22  ;;  %2489 = vmatprep.subr.bf16.mxu1 %v2775_v22 }
 0x101   :  { %v2967_v17 = vpack.c.bf16 %v310_v15, %v309_v16 }
 0x106   :  { %2194 = vmatmul.mubr.msk.f32.vlgmr.msra.gmra.mrb[0].mxu1 %vm101_vm0, %v2972_v18 }
 0x107   :  { %2484 = vmatpush3.bf16.xpose.msk.msra.mxu0 %vm2925_vm2, %v2957_v13  ;;  %2231 = vmatprep.mubr.msk.f32.mxu1 %vm2776_vm1, %v2777_v23 }
 0x108   :  { %2485 = vmatprep.subr.bf16.mxu0 %v2775_v22  ;;  %2491 = vmatpush3.bf16.msra.mxu1 %v3001_v29 }
 0x109   :  { %2492 = vmatprep.subr.bf16.mxu1 %v2775_v22 }
 0x10c   :  { %2494 = vmatpush3.bf16.msra.mxu1 %v3011_v32 }
 0x10d   :  { %2495 = vmatprep.subr.bf16.mxu1 %v2775_v22 }
 0x10f   :  { %2488 = vmatpush3.bf16.xpose.msk.msra.mxu0 %vm2925_vm2, %v2967_v17 }
 0x110   :  { %2501 = vmatprep.subr.bf16.mxu0 %v2775_v22  ;;  %2497 = vmatpush3.bf16.msra.mxu1 %v3021_v37 }
 0x111   :  { %2498 = vmatprep.subr.bf16.mxu1 %v2775_v22 }
 0x114   :  { %2500 = vmatpush3.bf16.msra.mxu1 %v3031_v40 }
 0x115   :  { %2514 = vmatprep.subr.bf16.mxu1 %v3128_v43 }
 0x116   :  { %2213 = vmatmul.mubr.msk.f32.vlgmr.msra.gmra.mrb[16].mxu0 %vm101_vm0, %v2972_v18 }
 0x117   :  { %2250 = vmatprep.mubr.msk.f32.mxu0 %vm2776_vm1, %v2777_v23  ;;  %2503 = vmatpush3.bf16.msra.mxu0 %v3040_v44 }
 0x118   :  { %2504 = vmatprep.subr.bf16.mxu0 %v2775_v22 }
 0x11b   :  { %2506 = vmatpush3.bf16.msra.mxu0 %v3050_v47 }
 0x11c   :  { %2507 = vmatprep.subr.bf16.mxu0 %v2775_v22 }
 0x11f   :  { %2509 = vmatpush3.bf16.msra.mxu0 %v3063_v52 }
 0x120   :  { %2510 = vmatprep.subr.bf16.mxu0 %v2775_v22 }
 0x123   :  { %2512 = vmatpush3.bf16.msra.mxu0 %v3075_v57 }
 0x124   :  { %2522 = vmatprep.subr.bf16.mxu0 %v3078_v58 }
 0x1d9   :  { %v405_v19 = vpop.f32.mrb[0].mxu1 }
 0x1da   :  { %v504_v20 = vsel %vm503_vm3, %v405_v19, 0.0  ;;  %v2195_v21 = vpop.f32.mrb[1].mxu1 }
 0x1db   :  { %505 = vadd.xlane.f32.xlu0 %v504_v20 }
 0x1e9   :  { %v2991_v24 = vpop.f32.mrb[16].mxu0 }
 0x1ea   :  { %v2214_v25 = vpop.f32.mrb[17].mxu0  ;;  %v507_v26 = vsel %vm503_vm3, %v2991_v24, 0.0 }
 0x1eb   :  { %508 = vadd.xlane.f32.xlu0 %v507_v26 }
 0x268   :  { %v506_v59 = vpop.xlane.xlu0 %505 }
 0x269   :  { %v510_v60 = vrot.slane %v506_v59, 4  ;;  %2667 = vrcp.f32 %v506_v59 }
 0x26b   :  { %v511_v61 = vadd.f32 %v510_v60, %v506_v59  ;;  %v3151_v59 = vld [vmem:[%s3349_s8] ss:$0 sm:$0xff] }
 0x26d   :  { %v512_v62 = vrot.slane %v511_v61, 2 }
 0x26f   :  { %v513_v0 = vadd.f32 %v512_v62, %v511_v61 }
 0x271   :  { %v514_v1 = vrot.slane %v513_v0, 1 }
 0x273   :  { %v2668_v2 = vpop.eup %2667  ;;  %v515_v3 = vadd.f32 %v514_v1, %v513_v0  ;;  %v3172_v1 = vld [vmem:[%s3348_s7] ss:$0 sm:$0xff]  ;;  %s2779_s7 = smov 32  }
 0x275   :  { %v524_v4 = vmul.f32 %v2668_v2, %v515_v3 }
 0x277   :  { %v526_v5 = vmul.f32 %v524_v4, %v405_v19 }
 0x278   :  { %v509_v7 = vpop.xlane.xlu0 %508 }
 0x279   :  { %v1933_v8 = vmul.f32 -1.442695, %v526_v5  ;;  %v516_v9 = vrot.slane %v509_v7, 4  ;;  %2669 = vrcp.f32 %v509_v7 }
 0x27b   :  { %2671 = vpow2.f32 %v1933_v8  ;;  %v517_v10 = vadd.f32 %v516_v9, %v509_v7 }
 0x27d   :  { %v518_v11 = vrot.slane %v517_v10, 2 }
 0x27f   :  { %v519_v12 = vadd.f32 %v518_v11, %v517_v10 }
 0x281   :  { %v520_v14 = vrot.slane %v519_v12, 1 }
 0x283   :  { %v2670_v15 = vpop.eup %2669  ;;  %v521_v16 = vadd.f32 %v520_v14, %v519_v12 }
 0x285   :  { %v2672_v20 = vpop.eup %2671  ;;  %v525_v21 = vmul.f32 %v2670_v15, %v521_v16 }
 0x286   :  { %v534_v25 = vadd.f32 1.0, %v2672_v20 }
 0x287   :  { %v527_v26 = vmul.f32 %v525_v21, %v2991_v24 }
 0x288   :  { %2673 = vrcp.f32 %v534_v25 }
 0x289   :  { %v1934_v27 = vmul.f32 -1.442695, %v527_v26 }
 0x28b   :  { %2675 = vpow2.f32 %v1934_v27 }
 0x292   :  { %v2674_v19 = vpop.eup %2673 }
 0x293   :  { %2232 = vmatmul.mubr.msk.f32.vlgmr.msra.gmra.mrb[2].mxu1 %vm503_vm3, %v2674_v19 }
 0x294   :  { %2516 = vmatpush3.bf16.msra.mxu1 %v3128_v43 }
 0x295   :  { %v2676_v28 = vpop.eup %2675  ;;  %2518 = vmatprep.subr.bf16.mxu1 %v3133_v46 }
 0x296   :  { %v535_v30 = vadd.f32 1.0, %v2676_v28 }
 0x298   :  { %2677 = vrcp.f32 %v535_v30  ;;  %2520 = vmatpush3.bf16.msra.mxu1 %v3133_v46 }
 0x299   :  { %2529 = vmatprep.subr.bf16.mxu1 %v2775_v22 }
 0x2a2   :  { %v2678_v24 = vpop.eup %2677 }
 0x2a3   :  { %2251 = vmatmul.mubr.msk.f32.vlgmr.msra.gmra.mrb[18].mxu0 %vm503_vm3, %v2678_v24 }
 0x2a4   :  { %2524 = vmatpush3.bf16.msra.mxu0 %v3078_v58  ;;  %2272 = vmatprep.mubr.msk.f32.mxu0 %vm101_vm0, %v2972_v18 }
 0x2a5   :  { %2526 = vmatprep.subr.bf16.mxu0 %v3090_v36 }
 0x2a8   :  { %2528 = vmatpush3.bf16.msra.mxu0 %v3090_v36 }
 0x2a9   :  { %2545 = vmatprep.subr.bf16.mxu0 %v2775_v22 }
 0x2ab   :  { %2273 = vmatmul.mubr.msk.f32.vlgmr.msra.gmra.mrb[20].mxu0 %vm101_vm0, %v2972_v18 }
 0x2ac   :  { %2310 = vmatprep.mubr.msk.f32.mxu0 %vm2776_vm1, %v2777_v23 }
 0x2b1   :  { %2548 = vmatpush3.bf16.xpose.msk.msra.mxu0 %vm2925_vm2, %v2945_v63 }
 0x2b2   :  { %2549 = vmatprep.subr.bf16.mxu0 %v2775_v22 }
 0x2b9   :  { %2552 = vmatpush3.bf16.xpose.msk.msra.mxu0 %vm2925_vm2, %v2955_v6 }
 0x2ba   :  { %2553 = vmatprep.subr.bf16.mxu0 %v2775_v22 }
 0x2c1   :  { %2556 = vmatpush3.bf16.xpose.msk.msra.mxu0 %vm2925_vm2, %v2957_v13 }
 0x2c2   :  { %2557 = vmatprep.subr.bf16.mxu0 %v2775_v22 }
 0x2c9   :  { %2560 = vmatpush3.bf16.xpose.msk.msra.mxu0 %vm2925_vm2, %v2967_v17 }
 0x2ca   :  { %2573 = vmatprep.subr.bf16.mxu0 %v2775_v22 }
 0x366   :  { %v609_v48 = vpop.f32.mrb[2].mxu1 }
 0x367   :  { %v686_v50 = vmul.f32 0.03125, %v609_v48  ;;  %v2233_v51 = vpop.f32.mrb[3].mxu1 }
 0x369   :  { %2261 = vmatprep.mubr.msk.f32.mxu1 %vm101_vm0, %v686_v50 }
 0x376   :  { %v682_v53 = vpop.f32.mrb[18].mxu0 }
 0x377   :  { %v687_v54 = vmul.f32 0.03125, %v682_v53  ;;  %v2252_v55 = vpop.f32.mrb[19].mxu0 }
 0x379   :  { %2262 = vmatmul.mubr.msk.f32.vlgmr.msra.gmra.mrb[4].mxu1 %vm101_vm0, %v687_v54 }
 0x37a   :  { %2532 = vmatpush3.bf16.xpose.msk.msra.mxu1 %vm2925_vm2, %v2929_v35  ;;  %2291 = vmatprep.mubr.msk.f32.mxu1 %vm2776_vm1, %v2777_v23 }
 0x37b   :  { %2533 = vmatprep.subr.bf16.mxu1 %v2775_v22 }
 0x37e   :  { %v2274_v60 = vpop.f32.mrb[20].mxu0 }
 0x37f   :  { %v835_v61 = vpop.f32.mrb[21].mxu0  ;;  %v841_v0 = vadd.f32 %v2274_v60, %v3151_v59 }
 0x380   :  { %v836_v62 = vadd.f32 %v3151_v59, %v835_v61 }
 0x382   :  { %2536 = vmatpush3.bf16.xpose.msk.msra.mxu1 %vm2925_vm2, %v2935_v42  ;;  %860 = vrot.lane.b32.xlu1 %v836_v62, %s2778_s4 }
 0x383   :  { %2537 = vmatprep.subr.bf16.mxu1 %v2775_v22 }
 0x386   :  { %862 = vrot.lane.b32.xlu1 %v841_v0, %s2778_s4 }
 0x38a   :  { %2540 = vmatpush3.bf16.xpose.msk.msra.mxu1 %vm2925_vm2, %v2937_v49 }
 0x38b   :  { %2541 = vmatprep.subr.bf16.mxu1 %v2775_v22 }
 0x392   :  { %2544 = vmatpush3.bf16.xpose.msk.msra.mxu1 %vm2925_vm2, %v2943_v56 }
 0x393   :  { %2561 = vmatprep.subr.bf16.mxu1 %v2775_v22 }
 0x3f4   :  { %v861_v16 = vpop.permute.xlu1 %860 }
 0x3f8   :  { %v863_v20 = vpop.permute.xlu1 %862 }
 0x44c   :  { %v2263_v2 = vpop.f32.mrb[4].mxu1 }
 0x44d   :  { %v766_v3 = vadd.f32 %v2263_v2, %v3172_v1  ;;  %v760_v4 = vpop.f32.mrb[5].mxu1 }
 0x44e   :  { %v761_v5 = vadd.f32 %v3172_v1, %v760_v4 }
 0x44f   :  { %v845_v7 = vadd.f32 %v841_v0, %v766_v3 }
 0x450   :  { %v844_v8 = vadd.f32 %v836_v62, %v761_v5 }
 0x451   :  { %v1942_v9 = vmul.f32 -1.442695, %v845_v7 }
 0x452   :  { %v1941_v10 = vmul.f32 -1.442695, %v844_v8 }
 0x453   :  { %2679 = vpow2.f32 %v1942_v9 }
 0x454   :  { %2681 = vpow2.f32 %v1941_v10 }
 0x45d   :  { %v2680_v11 = vpop.eup %2679 }
 0x45e   :  { %v2682_v12 = vpop.eup %2681  ;;  %v853_v14 = vadd.f32 1.0, %v2680_v11 }
 0x45f   :  { %v852_v15 = vadd.f32 1.0, %v2682_v12 }
 0x460   :  { %2683 = vrcp.f32 %v853_v14 }
 0x461   :  { %2685 = vrcp.f32 %v852_v15 }
 0x46a   :  { %v2684_v21 = vpop.eup %2683 }
 0x46b   :  { %v2686_v25 = vpop.eup %2685  ;;  %v867_v26 = vmul.f32 %v2684_v21, %v863_v20 }
 0x46c   :  { %v866_v27 = vmul.f32 %v2686_v25, %v861_v16  ;;  %v880_v39 = vsub.f32 1.0, %v2686_v25 }
 0x46d   :  { %872 = vrot.lane.b32.xlu1 %v867_v26, %s2778_s4 }
 0x46e   :  { %870 = vrot.lane.b32.xlu0 %v866_v27, %s2778_s4 }
 0x471   :  { %892 = vrot.lane.b32.xlu1 %v2972_v18, %s2779_s7  ;;  %v881_v18 = vsub.f32 1.0, %v2684_v21 }
 0x4df   :  { %v873_v19 = vpop.permute.xlu1 %872 }
 0x4e0   :  { %v871_v28 = vpop.permute.xlu0 %870  ;;  %v877_v31 = vadd.f32 %v873_v19, %v766_v3 }
 0x4e1   :  { %v876_v30 = vadd.f32 %v871_v28, %v761_v5 }
 0x4e3   :  { %2687 = vtanh.f32 %v876_v30  ;;  %v893_v38 = vpop.permute.xlu1 %892 }
 0x4e4   :  { %2689 = vtanh.f32 %v877_v31  ;;  %v895_v45 = vmul.f32 %v2686_v25, %v893_v38  ;;  %v896_v53 = vmul.f32 %v2684_v21, %v893_v38 }
 0x4ed   :  { %v2688_v33 = vpop.eup %2687 }
 0x4ee   :  { %884 = vrot.lane.b32.xlu1 %v2688_v33, %s2780_s13  ;;  %v2690_v24 = vpop.eup %2689 }
 0x4f2   :  { %886 = vrot.lane.b32.xlu1 %v2690_v24, %s2780_s13 }
 0x560   :  { %v885_v41 = vpop.permute.xlu1 %884 }
 0x561   :  { %v890_v48 = vmul.f32 %v885_v41, %v880_v39 }
 0x563   :  { %v3181_v50 = vadd.f32 %v895_v45, %v890_v48 }
 0x564   :  { %v887_v51 = vpop.permute.xlu1 %886 }
 0x565   :  { %v891_v54 = vmul.f32 %v887_v51, %v881_v18  ;;  %900 = vrot.lane.b32.xlu1 %v3181_v50, %s2780_s13 }
 0x567   :  { %v3185_v55 = vadd.f32 %v896_v53, %v891_v54 }
 0x569   :  { %975 = vrot.lane.b32.xlu1 %v3185_v55, %s2780_s13 }
 0x5d7   :  { %v3189_v60 = vpop.permute.xlu1 %900 }
 0x5d8   :  { %2292 = vmatmul.mubr.msk.f32.vlgmr.msra.gmra.mrb[6].mxu1 %vm101_vm0, %v3189_v60 }
 0x5d9   :  { %2563 = vmatpush3.bf16.msra.mxu1 %v3001_v29  ;;  %2329 = vmatprep.mubr.msk.f32.mxu1 %vm2776_vm1, %v2777_v23 }
 0x5da   :  { %2564 = vmatprep.subr.bf16.mxu1 %v2775_v22 }
 0x5db   :  { %v3197_v61 = vpop.permute.xlu1 %975 }
 0x5dc   :  { %2311 = vmatmul.mubr.msk.f32.vlgmr.msra.gmra.mrb[22].mxu0 %vm101_vm0, %v3197_v61 }
 0x5dd   :  { %2575 = vmatpush3.bf16.msra.mxu0 %v3040_v44  ;;  %2566 = vmatpush3.bf16.msra.mxu1 %v3011_v32 }
 0x5de   :  { %2576 = vmatprep.subr.bf16.mxu0 %v2775_v22  ;;  %2567 = vmatprep.subr.bf16.mxu1 %v2775_v22 }
 0x5df   :  { %2348 = vmatprep.mubr.msk.f32.mxu0 %vm2776_vm1, %v2777_v23 }
 0x5e1   :  { %2578 = vmatpush3.bf16.msra.mxu0 %v3050_v47  ;;  %2569 = vmatpush3.bf16.msra.mxu1 %v3021_v37 }
 0x5e2   :  { %2579 = vmatprep.subr.bf16.mxu0 %v2775_v22  ;;  %2570 = vmatprep.subr.bf16.mxu1 %v2775_v22 }
 0x5e5   :  { %2581 = vmatpush3.bf16.msra.mxu0 %v3063_v52  ;;  %2572 = vmatpush3.bf16.msra.mxu1 %v3031_v40 }
 0x5e6   :  { %2582 = vmatprep.subr.bf16.mxu0 %v2775_v22  ;;  %2586 = vmatprep.subr.bf16.mxu1 %v3128_v43 }
 0x5e9   :  { %2584 = vmatpush3.bf16.msra.mxu0 %v3075_v57 }
 0x5ea   :  { %2594 = vmatprep.subr.bf16.mxu0 %v3078_v58 }
 0x6ab   :  { %v970_v62 = vpop.f32.mrb[6].mxu1 }
 0x6ac   :  { %v2293_v0 = vpop.f32.mrb[7].mxu1  ;;  %v1049_v2 = vsel %vm503_vm3, %v970_v62, 0.0 }
 0x6ad   :  { %1050 = vadd.xlane.f32.xlu0 %v1049_v2 }
 0x6af   :  { %v1045_v3 = vpop.f32.mrb[22].mxu0 }
 0x6b0   :  { %v2312_v4 = vpop.f32.mrb[23].mxu0  ;;  %v1052_v5 = vsel %vm503_vm3, %v1045_v3, 0.0 }
 0x6b1   :  { %1053 = vadd.xlane.f32.xlu1 %v1052_v5 }
 0x73a   :  { %v1051_v7 = vpop.xlane.xlu0 %1050 }
 0x73b   :  { %v1055_v8 = vrot.slane %v1051_v7, 4  ;;  %2691 = vrcp.f32 %v1051_v7 }
 0x73d   :  { %v1056_v9 = vadd.f32 %v1055_v8, %v1051_v7 }
 0x73e   :  { %v1054_v10 = vpop.xlane.xlu1 %1053 }
 0x73f   :  { %v1057_v11 = vrot.slane %v1056_v9, 2  ;;  %v1061_v12 = vrot.slane %v1054_v10, 4  ;;  %2693 = vrcp.f32 %v1054_v10 }
 0x741   :  { %v1058_v14 = vadd.f32 %v1057_v11, %v1056_v9  ;;  %v1062_v15 = vadd.f32 %v1061_v12, %v1054_v10 }
 0x743   :  { %v1059_v16 = vrot.slane %v1058_v14, 1  ;;  %v1063_v20 = vrot.slane %v1062_v15, 2 }
 0x745   :  { %v2692_v21 = vpop.eup %2691  ;;  %v1060_v25 = vadd.f32 %v1059_v16, %v1058_v14  ;;  %v1064_v26 = vadd.f32 %v1063_v20, %v1062_v15 }
 0x747   :  { %v1069_v27 = vmul.f32 %v2692_v21, %v1060_v25  ;;  %v1065_v19 = vrot.slane %v1064_v26, 1 }
 0x749   :  { %v2694_v28 = vpop.eup %2693  ;;  %v1071_v30 = vmul.f32 %v1069_v27, %v970_v62  ;;  %v1066_v31 = vadd.f32 %v1065_v19, %v1064_v26 }
 0x74b   :  { %v1961_v33 = vmul.f32 -1.442695, %v1071_v30  ;;  %v1070_v24 = vmul.f32 %v2694_v28, %v1066_v31 }
 0x74d   :  { %2695 = vpow2.f32 %v1961_v33  ;;  %v1072_v38 = vmul.f32 %v1070_v24, %v1045_v3 }
 0x74f   :  { %v1962_v39 = vmul.f32 -1.442695, %v1072_v38 }
 0x751   :  { %2697 = vpow2.f32 %v1962_v39 }
 0x757   :  { %v2696_v41 = vpop.eup %2695 }
 0x758   :  { %v1079_v45 = vadd.f32 1.0, %v2696_v41 }
 0x75a   :  { %2699 = vrcp.f32 %v1079_v45 }
 0x75b   :  { %v2698_v48 = vpop.eup %2697 }
 0x75c   :  { %v1080_v18 = vadd.f32 1.0, %v2698_v48 }
 0x75e   :  { %2701 = vrcp.f32 %v1080_v18 }
 0x764   :  { %v2700_v51 = vpop.eup %2699 }
 0x765   :  { %2330 = vmatmul.mubr.msk.f32.vlgmr.msra.gmra.mrb[8].mxu1 %vm503_vm3, %v2700_v51 }
 0x766   :  { %2588 = vmatpush3.bf16.msra.mxu1 %v3128_v43 }
 0x767   :  { %2590 = vmatprep.subr.bf16.mxu1 %v3133_v46 }
 0x768   :  { %v2702_v53 = vpop.eup %2701 }
 0x769   :  { %2349 = vmatmul.mubr.msk.f32.vlgmr.msra.gmra.mrb[24].mxu0 %vm503_vm3, %v2702_v53 }
 0x76a   :  { %2596 = vmatpush3.bf16.msra.mxu0 %v3078_v58  ;;  %2370 = vmatprep.mubr.msk.f32.mxu0 %vm101_vm0, %v3189_v60 }
 0x76b   :  { %2598 = vmatprep.subr.bf16.mxu0 %v3090_v36  ;;  %2592 = vmatpush3.bf16.msra.mxu1 %v3133_v46 }
 0x76c   :  { %2601 = vmatprep.subr.bf16.mxu1 %v2775_v22 }
 0x76e   :  { %2600 = vmatpush3.bf16.msra.mxu0 %v3090_v36 }
 0x76f   :  { %2617 = vmatprep.subr.bf16.mxu0 %v2775_v22 }
 0x771   :  { %2371 = vmatmul.mubr.msk.f32.vlgmr.msra.gmra.mrb[26].mxu0 %vm101_vm0, %v3197_v61 }
 0x772   :  { %2408 = vmatprep.mubr.msk.f32.mxu0 %vm2776_vm1, %v2777_v23 }
 0x777   :  { %2620 = vmatpush3.bf16.xpose.msk.msra.mxu0 %vm2925_vm2, %v2945_v63 }
 0x778   :  { %2621 = vmatprep.subr.bf16.mxu0 %v2775_v22 }
 0x77f   :  { %2624 = vmatpush3.bf16.xpose.msk.msra.mxu0 %vm2925_vm2, %v2955_v6 }
 0x780   :  { %2625 = vmatprep.subr.bf16.mxu0 %v2775_v22 }
 0x787   :  { %2628 = vmatpush3.bf16.xpose.msk.msra.mxu0 %vm2925_vm2, %v2957_v13 }
 0x788   :  { %2629 = vmatprep.subr.bf16.mxu0 %v2775_v22 }
 0x78f   :  { %2632 = vmatpush3.bf16.xpose.msk.msra.mxu0 %vm2925_vm2, %v2967_v17 }
 0x790   :  { %2645 = vmatprep.subr.bf16.mxu0 %v2775_v22 }
 0x838   :  { %v1154_v63 = vpop.f32.mrb[8].mxu1 }
 0x839   :  { %v1231_v58 = vmul.f32 0.03125, %v1154_v63  ;;  %v2331_v36 = vpop.f32.mrb[9].mxu1 }
 0x83b   :  { %2359 = vmatprep.mubr.msk.f32.mxu1 %vm101_vm0, %v1231_v58 }
 0x83c   :  { %v1227_v6 = vpop.f32.mrb[24].mxu0 }
 0x83d   :  { %v1232_v43 = vmul.f32 0.03125, %v1227_v6  ;;  %v2350_v46 = vpop.f32.mrb[25].mxu0 }
 0x83f   :  { %2360 = vmatmul.mubr.msk.f32.vlgmr.msra.gmra.mrb[10].mxu1 %vm101_vm0, %v1232_v43 }
 0x840   :  { %2604 = vmatpush3.bf16.xpose.msk.msra.mxu1 %vm2925_vm2, %v2929_v35  ;;  %2389 = vmatprep.mubr.msk.f32.mxu1 %vm2776_vm1, %v2777_v23 }
 0x841   :  { %2605 = vmatprep.subr.bf16.mxu1 %v2775_v22 }
 0x844   :  { %v2372_v13 = vpop.f32.mrb[26].mxu0 }
 0x845   :  { %v1386_v17 = vadd.f32 %v2372_v13, %v3151_v59  ;;  %v1380_v54 = vpop.f32.mrb[27].mxu0 }
 0x846   :  { %v1381_v60 = vadd.f32 %v3151_v59, %v1380_v54 }
 0x847   :  { %1407 = vrot.lane.b32.xlu1 %v1386_v17, %s2778_s4 }
 0x848   :  { %2608 = vmatpush3.bf16.xpose.msk.msra.mxu1 %vm2925_vm2, %v2935_v42  ;;  %1405 = vrot.lane.b32.xlu0 %v1381_v60, %s2778_s4 }
 0x849   :  { %2609 = vmatprep.subr.bf16.mxu1 %v2775_v22 }
 0x850   :  { %2612 = vmatpush3.bf16.xpose.msk.msra.mxu1 %vm2925_vm2, %v2937_v49 }
 0x851   :  { %2613 = vmatprep.subr.bf16.mxu1 %v2775_v22 }
 0x858   :  { %2616 = vmatpush3.bf16.xpose.msk.msra.mxu1 %vm2925_vm2, %v2943_v56 }
 0x859   :  { %2633 = vmatprep.subr.bf16.mxu1 %v2775_v22 }
 0x8b9   :  { %v1408_v56 = vpop.permute.xlu1 %1407 }
 0x8ba   :  { %v1406_v9 = vpop.permute.xlu0 %1405 }
 0x912   :  { %v2361_v35 = vpop.f32.mrb[10].mxu1 }
 0x913   :  { %v1311_v59 = vadd.f32 %v2361_v35, %v3172_v1  ;;  %v1305_v42 = vpop.f32.mrb[11].mxu1 }
 0x914   :  { %v1306_v61 = vadd.f32 %v3172_v1, %v1305_v42 }
 0x915   :  { %v1390_v62 = vadd.f32 %v1386_v17, %v1311_v59 }
 0x916   :  { %v1389_v0 = vadd.f32 %v1381_v60, %v1306_v61 }
 0x917   :  { %v1970_v2 = vmul.f32 -1.442695, %v1390_v62 }
 0x918   :  { %v1969_v3 = vmul.f32 -1.442695, %v1389_v0 }
 0x919   :  { %2703 = vpow2.f32 %v1970_v2 }
 0x91a   :  { %2705 = vpow2.f32 %v1969_v3 }
 0x923   :  { %v2704_v49 = vpop.eup %2703 }
 0x924   :  { %v2706_v4 = vpop.eup %2705  ;;  %v1398_v5 = vadd.f32 1.0, %v2704_v49 }
 0x925   :  { %v1397_v7 = vadd.f32 1.0, %v2706_v4 }
 0x926   :  { %2707 = vrcp.f32 %v1398_v5 }
 0x927   :  { %2709 = vrcp.f32 %v1397_v7 }
 0x930   :  { %v2708_v34 = vpop.eup %2707 }
 0x931   :  { %v2710_v8 = vpop.eup %2709  ;;  %v1412_v10 = vmul.f32 %v2708_v34, %v1408_v56  ;;  %v1426_v21 = vsub.f32 1.0, %v2708_v34  ;;  %v1438_v27 = vmul.f32 %v2708_v34, %v3185_v55 }
 0x932   :  { %v1411_v11 = vmul.f32 %v2710_v8, %v1406_v9  ;;  %v1425_v26 = vsub.f32 1.0, %v2710_v8  ;;  %v1437_v30 = vmul.f32 %v2710_v8, %v3181_v50 }
 0x933   :  { %1417 = vrot.lane.b32.xlu1 %v1412_v10, %s2778_s4 }
 0x934   :  { %1415 = vrot.lane.b32.xlu0 %v1411_v11, %s2778_s4 }
 0x9a5   :  { %v1418_v1 = vpop.permute.xlu1 %1417 }
 0x9a6   :  { %v1422_v12 = vadd.f32 %v1418_v1, %v1311_v59  ;;  %v1416_v14 = vpop.permute.xlu0 %1415 }
 0x9a7   :  { %v1421_v15 = vadd.f32 %v1416_v14, %v1306_v61 }
 0x9a8   :  { %2711 = vtanh.f32 %v1422_v12 }
 0x9a9   :  { %2713 = vtanh.f32 %v1421_v15 }
 0x9b2   :  { %v2712_v16 = vpop.eup %2711 }
 0x9b3   :  { %v2714_v20 = vpop.eup %2713  ;;  %1431 = vrot.lane.b32.xlu1 %v2712_v16, %s2780_s13 }
 0x9b4   :  { %1429 = vrot.lane.b32.xlu0 %v2714_v20, %s2780_s13 }
 0xa25   :  { %v1432_v25 = vpop.permute.xlu1 %1431 }
 0xa26   :  { %v1436_v19 = vmul.f32 %v1432_v25, %v1426_v21  ;;  %v1430_v28 = vpop.permute.xlu0 %1429 }
 0xa27   :  { %v1435_v31 = vmul.f32 %v1430_v28, %v1425_v26 }
 0xa28   :  { %v1440_v33 = vadd.f32 %v1438_v27, %v1436_v19  ;;  %v1783_v27 = vlaneseq }
 0xa29   :  { %v1439_v24 = vadd.f32 %v1437_v30, %v1435_v31 }
 0xa2a   :  { %1517 = vrot.lane.b32.xlu1 %v1440_v33, %s2780_s13  ;;  %v1784_v19 = vand.u32 127, %v1783_v27  ;;  %v1786_v28 = vshrl.u32 %v1783_v27, 7 }
 0xa2b   :  { %1442 = vrot.lane.b32.xlu0 %v1439_v24, %s2780_s13 }
 0xa2c   :  { %v1800_v30 = vadd.s32 2, %v1784_v19  ;;  %v1814_v31 = vadd.s32 4, %v1784_v19  ;;  %v1828_v33 = vadd.s32 6, %v1784_v19  ;;  %v1787_v24 = vsub.s32 %v1784_v19, %v1786_v28 }
 0xa9c   :  { %v1518_v38 = vpop.permute.xlu1 %1517 }
 0xa9d   :  { %2409 = vmatmul.mubr.msk.f32.vlgmr.msra.gmra.mrb[28].mxu0 %vm101_vm0, %v1518_v38  ;;  %v1443_v39 = vpop.permute.xlu0 %1442  ;;  %v1803_v38 = vsub.s32 %v1800_v30, %v1786_v28 }
 0xa9e   :  { %2390 = vmatmul.mubr.msk.f32.vlgmr.msra.gmra.mrb[12].mxu1 %vm101_vm0, %v1443_v39  ;;  %2647 = vmatpush3.bf16.msra.mxu0 %v3040_v44 }
 0xa9f   :  { %2635 = vmatpush3.bf16.msra.mxu1 %v3001_v29  ;;  %2648 = vmatprep.subr.bf16.mxu0 %v2775_v22 }
 0xaa0   :  { %2636 = vmatprep.subr.bf16.mxu1 %v2775_v22  ;;  %2446 = vmatprep.mubr.msk.f32.mxu0 %vm2776_vm1, %v2777_v23 }
 0xaa1   :  { %2427 = vmatprep.mubr.msk.f32.mxu1 %vm2776_vm1, %v2777_v23 }
 0xaa2   :  { %2650 = vmatpush3.bf16.msra.mxu0 %v3050_v47 }
 0xaa3   :  { %2638 = vmatpush3.bf16.msra.mxu1 %v3011_v32  ;;  %2651 = vmatprep.subr.bf16.mxu0 %v2775_v22 }
 0xaa4   :  { %2639 = vmatprep.subr.bf16.mxu1 %v2775_v22 }
 0xaa6   :  { %2653 = vmatpush3.bf16.msra.mxu0 %v3063_v52 }
 0xaa7   :  { %2641 = vmatpush3.bf16.msra.mxu1 %v3021_v37  ;;  %2654 = vmatprep.subr.bf16.mxu0 %v2775_v22 }
 0xaa8   :  { %2642 = vmatprep.subr.bf16.mxu1 %v2775_v22 }
 0xaaa   :  { %2656 = vmatpush3.bf16.msra.mxu0 %v3075_v57 }
 0xaab   :  { %2644 = vmatpush3.bf16.msra.mxu1 %v3031_v40 }
 0xb70   :  { %v1587_v23 = vpop.f32.mrb[28].mxu0 }
 0xb71   :  { %v1512_v29 = vpop.f32.mrb[12].mxu1  ;;  %v2410_v44 = vpop.f32.mrb[29].mxu0  ;;  %v1594_v32 = vsel %vm503_vm3, %v1587_v23, 0.0 }
 0xb72   :  { %1595 = vadd.xlane.f32.xlu1 %v1594_v32  ;;  %v2391_v47 = vpop.f32.mrb[13].mxu1  ;;  %v1591_v50 = vsel %vm503_vm3, %v1512_v29, 0.0 }
 0xb73   :  { %1592 = vadd.xlane.f32.xlu0 %v1591_v50 }
 0xbff   :  { %v1596_v52 = vpop.xlane.xlu1 %1595 }
 0xc00   :  { %v1603_v37 = vrot.slane %v1596_v52, 4  ;;  %2715 = vrcp.f32 %v1596_v52  ;;  %v1593_v55 = vpop.xlane.xlu0 %1592 }
 0xc01   :  { %v1597_v41 = vrot.slane %v1593_v55, 4  ;;  %2717 = vrcp.f32 %v1593_v55 }
 0xc02   :  { %v1604_v22 = vadd.f32 %v1603_v37, %v1596_v52 }
 0xc03   :  { %v1598_v57 = vadd.f32 %v1597_v41, %v1593_v55 }
 0xc04   :  { %v1605_v45 = vrot.slane %v1604_v22, 2 }
 0xc05   :  { %v1599_v40 = vrot.slane %v1598_v57, 2 }
 0xc06   :  { %v1606_v48 = vadd.f32 %v1605_v45, %v1604_v22 }
 0xc07   :  { %v1600_v18 = vadd.f32 %v1599_v40, %v1598_v57 }
 0xc08   :  { %v1607_v51 = vrot.slane %v1606_v48, 1 }
 0xc09   :  { %v1601_v53 = vrot.slane %v1600_v18, 1 }
 0xc0a   :  { %v2716_v63 = vpop.eup %2715  ;;  %v1608_v58 = vadd.f32 %v1607_v51, %v1606_v48 }
 0xc0b   :  { %v2718_v36 = vpop.eup %2717  ;;  %v1602_v6 = vadd.f32 %v1601_v53, %v1600_v18 }
 0xc0c   :  { %v1612_v43 = vmul.f32 %v2716_v63, %v1608_v58 }
 0xc0d   :  { %v1611_v46 = vmul.f32 %v2718_v36, %v1602_v6 }
 0xc0e   :  { %v1614_v13 = vmul.f32 %v1612_v43, %v1587_v23  ;;  %v1817_v23 = vsub.s32 %v1814_v31, %v1786_v28 }
 0xc0f   :  { %v1613_v17 = vmul.f32 %v1611_v46, %v1512_v29  ;;  %v1831_v29 = vsub.s32 %v1828_v33, %v1786_v28 }
 0xc10   :  { %v1990_v54 = vmul.f32 -1.442695, %v1614_v13 }
 0xc11   :  { %v1989_v60 = vmul.f32 -1.442695, %v1613_v17 }
 0xc12   :  { %2719 = vpow2.f32 %v1990_v54 }
 0xc13   :  { %2721 = vpow2.f32 %v1989_v60 }
 0xc1c   :  { %v2720_v35 = vpop.eup %2719 }
 0xc1d   :  { %v2722_v59 = vpop.eup %2721  ;;  %v1622_v42 = vadd.f32 1.0, %v2720_v35 }
 0xc1e   :  { %v1621_v61 = vadd.f32 1.0, %v2722_v59 }
 0xc1f   :  { %2723 = vrcp.f32 %v1622_v42 }
 0xc20   :  { %2725 = vrcp.f32 %v1621_v61 }
 0xc29   :  { %v2724_v62 = vpop.eup %2723 }
 0xc2a   :  { %v2726_v0 = vpop.eup %2725  ;;  %2447 = vmatmul.mubr.msk.f32.vlgmr.msra.gmra.mrb[30].mxu0 %vm503_vm3, %v2724_v62  ;;  %v1851_v2 = vmax.f32 %v2724_v62, 0.0 }
 0xc2b   :  { %2428 = vmatmul.mubr.msk.f32.vlgmr.msra.gmra.mrb[14].mxu1 %vm503_vm3, %v2726_v0  ;;  %v1850_v3 = vmax.f32 %v2726_v0, 0.0 }
 0xc2c   :  { %v1853_v49 = vsel %vm503_vm3, %v1851_v2, 0.0 }
 0xc2d   :  { %v1852_v4 = vsel %vm503_vm3, %v1850_v3, 0.0 }
 0xc2e   :  { %v1854_v5 = vadd.f32 %v1853_v49, %v1852_v4 }
 0xc30   :  { %1855 = vadd.xlane.f32.xlu1 %v1854_v5 }
 0xcbd   :  { %v1856_v7 = vpop.xlane.xlu1 %1855 }
 0xcbe   :  { %v1857_v34 = vrot.slane %v1856_v7, 4 }
 0xcc0   :  { %v1858_v56 = vadd.f32 %v1857_v34, %v1856_v7 }
 0xcc2   :  { %v1859_v8 = vrot.slane %v1858_v56, 2 }
 0xcc4   :  { %v1860_v9 = vadd.f32 %v1859_v8, %v1858_v56 }
 0xcc6   :  { %v1861_v10 = vrot.slane %v1860_v9, 1 }
 0xcc8   :  { %v1862_v11 = vadd.f32 %v1861_v10, %v1860_v9 }
 0xcca   :  { %2657 = vpush %v1862_v11 }
 0xcfb   :  { %s2658_s14 = spop %2657 }
 0xcfc   :  { %s1864_s15 = smul.f32 0.0009765625, %s2658_s14 }
 0xcfd   :  { %v1769_v1 = vpop.f32.mrb[30].mxu0 }
 0xcfe   :  { %v1865_v12 = vstv %s1864_s15  ;;  %v1696_v14 = vpop.f32.mrb[14].mxu1  ;;  %v2448_v15 = vpop.f32.mrb[31].mxu0  ;;  %v1774_v21 = vmul.f32 0.03125, %v1769_v1 }
 0xcff   :  { %1867 = vst.msk [vmem:[#allocation4] sm:$0x1] %vm1866_vm4, %v1865_v12  ;;  %v1773_v16 = vmul.f32 0.03125, %v1696_v14  ;;  %v2429_v20 = vpop.f32.mrb[15].mxu1 }
 0xd00   :  { %v1778_v26 = vsel %vm101_vm0, %v1774_v21, 0.0 }
 0xd01   :  { %v1775_v25 = vsel %vm101_vm0, %v1773_v16, 0.0 }
 0xd02   :  { %1776 = vadd.xlane.f32.xlu0 %v1775_v25 }
 0xd06   :  { %1779 = vadd.xlane.f32.xlu0 %v1778_v26 }
 0xd8f   :  { %v1777_v39 = vpop.xlane.xlu0 %1776 }
 0xd90   :  { %v1788_v44 = vrot.slane %v1777_v39, %v1787_v24  ;;  %v1804_v32 = vrot.slane %v1777_v39, %v1803_v38  ;;  %v1818_v41 = vrot.slane %v1777_v39, %v1817_v23  ;;  %v1832_v22 = vrot.slane %v1777_v39, %v1831_v29 }
 0xd93   :  { %v1780_v47 = vpop.xlane.xlu0 %1779 }
 0xd94   :  { %v1792_v50 = vrot.slane %v1780_v47, %v1787_v24  ;;  %v1808_v52 = vrot.slane %v1780_v47, %v1803_v38  ;;  %v1822_v37 = vrot.slane %v1780_v47, %v1817_v23  ;;  %v1836_v55 = vrot.slane %v1780_v47, %v1831_v29 }
 0xd96   :  { %v1809_v57 = vsel %vm1793_vm5, %v1808_v52, %v1804_v32  ;;  %v1794_v45 = vsel %vm1793_vm5, %v1792_v50, %v1788_v44  ;;  %v1837_v18 = vsel %vm1793_vm5, %v1836_v55, %v1832_v22  ;;  %v1823_v51 = vsel %vm1793_vm5, %v1822_v37, %v1818_v41 }
 0xd97   :  { %v1811_v40 = vsel %vm1796_vm6, %v1809_v57, 0.0  ;;  %v1797_v48 = vsel %vm1796_vm6, %v1794_v45, 0.0  ;;  %v1839_v53 = vsel %vm1796_vm6, %v1837_v18, 0.0  ;;  %v1825_v63 = vsel %vm1796_vm6, %v1823_v51, 0.0 }
 0xd98   :  { %1812 = vadd.xlane.f32.xlu1 %v1811_v40  ;;  %1798 = vadd.xlane.f32.xlu0 %v1797_v48 }
 0xd9c   :  { %1840 = vadd.xlane.f32.xlu1 %v1839_v53  ;;  %1826 = vadd.xlane.f32.xlu0 %v1825_v63 }
 0xd9d   :  { %2738 = shalt.err (!%p2735_p4)
}
 0xd9e   :  { %s2739_s22 = scalar_lea.hbm %s3351_s10, 16 }
 0xd9f   :  { %p2740_p5 = scmp.ne.s32.totalorder %s3351_s10, %s2739_s22  ;;  %p2743_p6 = scmp.lt.u32.totalorder %s2739_s22, %s3351_s10 }
 0xda1   :  { %p2745_p7 = pnand %p2743_p6, %p2740_p5 }
 0xda3   :  { %2748 = shalt.err (!%p2745_p7)
}
 0xda4   :  { %1887 = dma.vmem_to_hbm [thread:$0]  %s1885_s17, 16, %s3351_s10, [#allocation5]   ;;  %vm1842_vm7 = vcmask 7168   ;;  %vm1844_vm8 = vcmask 15360   ;;  %vm1846_vm9 = vcmask 23552   ;;  %vm1848_vm10 = vcmask 25600  }
 0xda5   :  { %s2782_s3 = smov [#allocation2]  }
 0xda6   :  { %s1874_s27 = sshll.u32 %s2782_s3, 4  ;;  %s1875_s27 = int_to_ptr.vmem [resolvable:$true] %s1874_s27 }
 0xda7   :  { %s2749_s28 = scalar_lea.vmem %s1875_s27, 32  ;;  %p2754_p9 = scmp.lt.s32.totalorder %s1875_s27, %s1875_s27 }
 0xda8   :  { %p2750_p8 = scmp.ne.s32.totalorder %s1875_s27, %s2749_s28  ;;  %p2755_p10 = scmp.lt.s32.totalorder %s2749_s28, %s2749_s28 }
 0xdaa   :  { %p2756_p11 = por %p2755_p10, %p2754_p9 }
 0xdac   :  { %p2757_p12 = pnand %p2756_p11, %p2750_p8 }
 0xe25   :  { %v1813_v58 = vpop.xlane.xlu1 %1812  ;;  %v1799_v36 = vpop.xlane.xlu0 %1798 }
 0xe26   :  { %v1843_v6 = vsel %vm1842_vm7, %v1799_v36, %v1813_v58 }
 0xe29   :  { %v1841_v43 = vpop.xlane.xlu1 %1840  ;;  %v1827_v46 = vpop.xlane.xlu0 %1826 }
 0xe2a   :  { %v1845_v13 = vsel %vm1844_vm8, %v1843_v6, %v1827_v46 }
 0xe2b   :  { %v1847_v17 = vsel %vm1846_vm9, %v1845_v13, %v1841_v43 }
 0xe2c   :  { %1849 = vst.msk [vmem:[#allocation2] sm:$0x3] %vm1848_vm10, %v1847_v17 }
 0xe2d   :  { %2760 = shalt.err (!%p2757_p12)
}
 0xe2e   :  { %s2761_s30 = scalar_lea.hbm %s3350_s9, 32 }
 0xe2f   :  { %p2762_p13 = scmp.ne.s32.totalorder %s3350_s9, %s2761_s30  ;;  %p2765_p0 = scmp.lt.u32.totalorder %s2761_s30, %s3350_s9 }
 0xe31   :  { %p2767_p1 = pnand %p2765_p0, %p2762_p13 }
 0xe33   :  { %2770 = shalt.err (!%p2767_p1)
}
 0xe34   :  { %1877 = dma.vmem_to_hbm [thread:$0]  %s1875_s27, 32, %s3350_s9, [#allocation3]  }
 0xe35   :  { %2771 = dma.done.wait [#allocation3], 32  }
 0xe36   :  { %2772 = vsyncadd [#allocation3], 4294967264 }
 0xe37   :  { %2773 = dma.done.wait [#allocation5], 16  }
 0xe38   :  { %2774 = vsyncadd [#allocation5], 4294967280 }
 0xe39   :  { %1894 = vsyncpa [#allocation3], 1 }
 0xe3a   :  { %1895 = vsyncpa [#allocation5], 1 }

</bundles_post_ra>
